<compile_context>
chip_gen: v7x
topology: tpu7x:2x2x1
jax: 0.10.0
libtpu: 0.0.40
codegen_flags: <defaults>
</compile_context>

<pallas_src>
import functools
import math

import jax
import jax.numpy as jnp
from jax import lax
from jax.experimental import pallas as pl
from jax.experimental.pallas import tpu as pltpu

_LN2 = math.log(2.0)
_INV_LN2 = 1.0 / _LN2


def _recip(x, use_eup):
    if not use_eup:
        return 1.0 / x
    # EUP approximate reciprocal + one Newton-Raphson step: ~1e-7 relative error,
    # smooth enough that it cancels in the erf(a + delta) - erf(a) differences.
    r = pl.reciprocal(x, approx=True)
    return r * (2.0 - x * r)


def _erf(x, use_eup=False):
    # Abramowitz & Stegun 7.1.26 rational approximation, max abs error ~1.5e-7.
    # TODO(synk): torch.erf has no dedicated Pallas/Mosaic TPU primitive; this
    # approximation is well below the tolerance of the rate computation.
    a1, a2, a3, a4, a5 = 0.254829592, -0.284496736, 1.421413741, -1.453152027, 1.061405429
    p = 0.3275911
    sgn = jnp.where(x < 0.0, -1.0, 1.0)
    ax = jnp.abs(x)
    t = _recip(1.0 + p * ax, use_eup)
    poly = ((((a5 * t + a4) * t + a3) * t + a2) * t + a1) * t
    return sgn * (1.0 - poly * jnp.exp(-ax * ax))


def _rate2b(sym, mean, conf, nlevels, use_eup=False):
    inv_n = 1.0 / nlevels
    num = (_erf((sym + inv_n - mean) * conf, use_eup) - _erf((sym - mean) * conf, use_eup)
           + 1.0 / (nlevels * 4096.0))
    den = (_erf((1.0 - mean) * conf, use_eup) - _erf((-1.0 - mean) * conf, use_eup)
           + 2.0 / 4096.0)
    if use_eup:
        prob = num * pl.reciprocal(den, approx=True)   # den >= 2/4096 -> approx is safe
    else:
        prob = num / den
    return -jnp.log(prob) * _INV_LN2


def _compressor_kernel(x_ref, m_ref, wp_ref, bp_ref, o_ref, *, width):
    # x_ref : (3, bT, HWp) VMEM  -- channel-major, spatially flattened input block
    # m_ref : (3, HWp)     VMEM  -- [right-valid, down-valid, diag-valid] masks
    # wp_ref: (6, 3) SMEM, bp_ref: (6,) SMEM -- stand-in predictor 1x1 conv params
    # o_ref : (bT, HWp)    VMEM  -- per-pixel bit cost (size_mask) for this block
    _, bt, hwp = x_ref.shape

    x0 = x_ref[0]
    x1 = x_ref[1]
    x2 = x_ref[2]

    # Hoist mask broadcasts out of the per-channel work (no CSE of broadcasts).
    m_r = jnp.broadcast_to(m_ref[0:1, :], (bt, hwp))
    m_d = jnp.broadcast_to(m_ref[1:2, :], (bt, hwp))
    m_rd = jnp.broadcast_to(m_ref[2:3, :], (bt, hwp))

    def fwd_diff(y):
        # 2x2 forward difference with zero padding at the right/bottom edge:
        #   d[p] = 0.25 * (y[p] - y[p+1] - y[p+W] + y[p+W+1])
        # Neighbours past the edge (and roll wrap-arounds) are masked to zero.
        # Lane rolls run on the XLU; masks/adds on the VPU -- no MXU involved.
        y_r = pltpu.roll(y, shift=hwp - 1, axis=1)            # y[p + 1]
        y_d = pltpu.roll(y, shift=hwp - width, axis=1)        # y[p + W]
        y_rd = pltpu.roll(y, shift=hwp - width - 1, axis=1)   # y[p + W + 1]
        return 0.25 * (y - y_r * m_r - y_d * m_d + y_rd * m_rd)

    # color_transform (fixed 1x1 conv + bias) fused into the diff inputs.
    d0 = fwd_diff(x0 - x1)
    d1 = fwd_diff(2.0 * x1 - 1.0)
    d2 = fwd_diff(x2 - x1)

    # Predictor fused into the per-channel rate loop (only 2 predictor channels
    # live per iteration instead of materializing all 6 up front).
    # TODO(synk): currentcodec.Codec is an undefined external module; replaced by
    # a deterministic 1x1 conv producing the 6 channels (3 mean + 3 lgconf).
    bits = None
    for c, (sym, nlev) in enumerate(((d0, 512.0), (d1, 256.0), (d2, 512.0))):
        mean_c = jnp.clip(
            wp_ref[c, 0] * d0 + wp_ref[c, 1] * d1 + wp_ref[c, 2] * d2 + bp_ref[c],
            -1.0, 1.0)
        lgconf_c = jnp.minimum(
            jnp.abs(wp_ref[3 + c, 0] * d0 + wp_ref[3 + c, 1] * d1
                    + wp_ref[3 + c, 2] * d2 + bp_ref[3 + c]),
            11.0)
        conf_c = jnp.exp(lgconf_c * _LN2)            # 2 ** lgconf
        r = _rate2b(sym, mean_c, conf_c, nlev, use_eup=True)
        bits = r if bits is None else bits + r

    o_ref[...] = bits


def _pick_batch_tile(n, hwp, max_block_elems=1 << 16):
    # Prefer a sublane-aligned batch tile (multiple of 8); otherwise process the
    # whole (small) batch per grid step so the block dim equals the array dim.
    for cand in (64, 32, 16, 8):
        if n % cand == 0 and cand * hwp <= max_block_elems:
            return cand
    return n


def compressor_forward(x, wp, bp):
    """x: (N, 3, H, W) float32; returns (bpp scalar, size_mask (N, 1, H, W))."""
    n, c, h, w = x.shape
    assert c == 3
    hw = h * w
    hwp = ((hw + 127) // 128) * 128          # lane-dense (multiple of 128) spatial length
    bt = _pick_batch_tile(n, hwp)
    # TODO(synk): for very large images (3 * bt * hwp f32 beyond a few MiB) the
    # spatial axis should additionally be tiled with a one-row halo.

    # Channel-major, spatially flattened view: (3, N, H*W), padded to (3, N, hwp).
    xt = jnp.transpose(x, (1, 0, 2, 3)).reshape(3, n, hw)
    if hwp != hw:
        xt = jnp.pad(xt, ((0, 0), (0, 0), (0, hwp - hw)))

    # Edge-validity masks for the flattened forward difference, built once in the
    # wrapper instead of being regenerated on every (serial) grid step.
    p = jnp.arange(hwp, dtype=jnp.int32)
    valid = p < hw
    m_right = ((p % w) != (w - 1)) & valid
    m_down = (p < (h - 1) * w) & valid
    masks = jnp.stack([m_right, m_down, m_right & m_down]).astype(jnp.float32)

    out = pl.pallas_call(
        functools.partial(_compressor_kernel, width=w),
        out_shape=jax.ShapeDtypeStruct((n, hwp), jnp.float32),
        grid_spec=pltpu.PrefetchScalarGridSpec(
            num_scalar_prefetch=0,
            grid=(n // bt,),
            in_specs=[
                pl.BlockSpec((3, bt, hwp), lambda b: (0, b, 0)),
                pl.BlockSpec((3, hwp), lambda b: (0, 0)),
                pl.BlockSpec(memory_space=pltpu.MemorySpace.SMEM),
                pl.BlockSpec(memory_space=pltpu.MemorySpace.SMEM),
            ],
            out_specs=pl.BlockSpec((bt, hwp), lambda b: (b, 0)),
        ),
        compiler_params=pltpu.CompilerParams(
            dimension_semantics=("parallel",),
            vmem_limit_bytes=32 * 1024 * 1024,
        ),
    )(xt, masks, wp, bp)

    size_mask = out[:, :hw].reshape(n, 1, h, w)
    bpp = jnp.sum(size_mask) * (1.0 / x.size)     # x.nelement() == N*3*H*W
    return bpp, size_mask


# ---------------- pure-JAX reference (for correctness check) ----------------
def reference_forward(x, wp, bp):
    x0, x1, x2 = x[:, 0], x[:, 1], x[:, 2]
    y = jnp.stack([x0 - x1, 2.0 * x1 - 1.0, x2 - x1], axis=1)          # color_transform
    yp = jnp.pad(y, ((0, 0), (0, 0), (0, 1), (0, 1)))                  # pad right/bottom
    d = 0.25 * (yp[:, :, :-1, :-1] - yp[:, :, :-1, 1:]                 # differentiate_xy
                - yp[:, :, 1:, :-1] + yp[:, :, 1:, 1:])
    res = jnp.einsum("kc,nchw->nkhw", wp, d,
                     precision=lax.Precision.HIGHEST) + bp[None, :, None, None]
    mean = jnp.clip(res[:, :3], -1.0, 1.0)
    lgconf = jnp.minimum(jnp.abs(res[:, 3:]), 11.0)
    conf = jnp.exp2(lgconf)

    size_mask = (_rate2b(d[:, 0:1], mean[:, 0:1], conf[:, 0:1], 512.0)
                 + _rate2b(d[:, 1:2], mean[:, 1:2], conf[:, 1:2], 256.0)
                 + _rate2b(d[:, 2:3], mean[:, 2:3], conf[:, 2:3], 512.0))
    bpp = jnp.sum(size_mask) * (1.0 / x.size)
    return bpp, size_mask


if __name__ == "__main__":
    key = jax.random.PRNGKey(0)
    kx, kw, kb = jax.random.split(key, 3)

    N, C, H, W = 2, 3, 16, 16
    x = jax.random.uniform(kx, (N, C, H, W), jnp.float32)              # image-like input in [0,1)
    # Deterministic stand-in Codec parameters (1x1 conv 3 -> 6 channels).
    wp = 0.5 * jax.random.normal(kw, (6, 3), jnp.float32)
    bp = 0.1 * jax.random.normal(kb, (6,), jnp.float32)

    bpp, size_mask = compressor_forward(x, wp, bp)
    jax.block_until_ready((bpp, size_mask))

    bpp_ref, mask_ref = reference_forward(x, wp, bp)
    assert size_mask.shape == (N, 1, H, W)
    assert bool(jnp.allclose(size_mask, mask_ref, rtol=1e-2, atol=1e-2)), "size_mask mismatch"
    assert bool(jnp.allclose(bpp, bpp_ref, rtol=1e-2, atol=1e-2)), "bpp mismatch"

    print("KERNEL_OK")
</pallas_src>

<mosaic_0001>
module attributes {stable_mosaic.version = 11 : i64} {
  func.func @_compressor_kernel(%arg0: i32, %arg1: memref<3x2x256xf32, #tpu.memory_space<vmem>>, %arg2: memref<3x256xf32, #tpu.memory_space<vmem>>, %arg3: memref<6x3xf32, #tpu.memory_space<smem>>, %arg4: memref<6xf32, #tpu.memory_space<smem>>, %arg5: memref<2x256xf32, #tpu.memory_space<vmem>>) attributes {dimension_semantics = [#tpu.dimension_semantics<parallel>], iteration_bounds = array<i64: 1>, scalar_prefetch = 0 : i64, scratch_operands = 0 : i64, tpu.core_type = #tpu.core_type<tc>, window_params = [{transform_indices = @transform_0, window_bounds = array<i64: 3, 2, 256>}, {pipeline_mode = #tpu.pipeline_mode<synchronous>, transform_indices = @transform_1, window_bounds = array<i64: 3, 256>}, {transform_indices = @transform_2, window_bounds = array<i64: 6, 3>}, {transform_indices = @transform_3, window_bounds = array<i64: 6>}, {transform_indices = @transform_4, window_bounds = array<i64: 2, 256>}]} {
    %c0 = arith.constant 0 : index
    %c0_0 = arith.constant 0 : index
    %c0_1 = arith.constant 0 : index
    %0 = vector.load %arg1[%c0, %c0_0, %c0_1] : memref<3x2x256xf32, #tpu.memory_space<vmem>>, vector<1x2x256xf32>
    %1 = vector.shape_cast %0 : vector<1x2x256xf32> to vector<2x256xf32>
    %c1 = arith.constant 1 : index
    %c0_2 = arith.constant 0 : index
    %c0_3 = arith.constant 0 : index
    %2 = vector.load %arg1[%c1, %c0_2, %c0_3] : memref<3x2x256xf32, #tpu.memory_space<vmem>>, vector<1x2x256xf32>
    %3 = vector.shape_cast %2 : vector<1x2x256xf32> to vector<2x256xf32>
    %c2 = arith.constant 2 : index
    %c0_4 = arith.constant 0 : index
    %c0_5 = arith.constant 0 : index
    %4 = vector.load %arg1[%c2, %c0_4, %c0_5] : memref<3x2x256xf32, #tpu.memory_space<vmem>>, vector<1x2x256xf32>
    %5 = vector.shape_cast %4 : vector<1x2x256xf32> to vector<2x256xf32>
    %c0_6 = arith.constant 0 : index
    %c0_7 = arith.constant 0 : index
    %6 = vector.load %arg2[%c0_6, %c0_7] : memref<3x256xf32, #tpu.memory_space<vmem>>, vector<1x256xf32>
    %7 = vector.shape_cast %6 : vector<1x256xf32> to vector<1x256xf32>
    %8 = vector.broadcast %7 : vector<1x256xf32> to vector<2x256xf32>
    %c1_8 = arith.constant 1 : index
    %c0_9 = arith.constant 0 : index
    %9 = vector.load %arg2[%c1_8, %c0_9] : memref<3x256xf32, #tpu.memory_space<vmem>>, vector<1x256xf32>
    %10 = vector.shape_cast %9 : vector<1x256xf32> to vector<1x256xf32>
    %11 = vector.broadcast %10 : vector<1x256xf32> to vector<2x256xf32>
    %c2_10 = arith.constant 2 : index
    %c0_11 = arith.constant 0 : index
    %12 = vector.load %arg2[%c2_10, %c0_11] : memref<3x256xf32, #tpu.memory_space<vmem>>, vector<1x256xf32>
    %13 = vector.shape_cast %12 : vector<1x256xf32> to vector<1x256xf32>
    %14 = vector.broadcast %13 : vector<1x256xf32> to vector<2x256xf32>
    %15 = arith.subf %1, %3 : vector<2x256xf32>
    %c255_i32 = arith.constant 255 : i32
    %16 = tpu.dynamic_rotate %15 by %c255_i32 dim 1 : vector<2x256xf32>, i32 -> vector<2x256xf32>
    %c240_i32 = arith.constant 240 : i32
    %17 = tpu.dynamic_rotate %15 by %c240_i32 dim 1 : vector<2x256xf32>, i32 -> vector<2x256xf32>
    %c239_i32 = arith.constant 239 : i32
    %18 = tpu.dynamic_rotate %15 by %c239_i32 dim 1 : vector<2x256xf32>, i32 -> vector<2x256xf32>
    %19 = arith.mulf %16, %8 : vector<2x256xf32>
    %20 = arith.subf %15, %19 : vector<2x256xf32>
    %21 = arith.mulf %17, %11 : vector<2x256xf32>
    %22 = arith.subf %20, %21 : vector<2x256xf32>
    %23 = arith.mulf %18, %14 : vector<2x256xf32>
    %24 = arith.addf %22, %23 : vector<2x256xf32>
    %cst = arith.constant 2.500000e-01 : f32
    %25 = vector.broadcast %cst : f32 to vector<2x256xf32>
    %26 = arith.mulf %25, %24 : vector<2x256xf32>
    %cst_12 = arith.constant 2.000000e+00 : f32
    %27 = vector.broadcast %cst_12 : f32 to vector<2x256xf32>
    %28 = arith.mulf %27, %3 : vector<2x256xf32>
    %cst_13 = arith.constant 1.000000e+00 : f32
    %29 = vector.broadcast %cst_13 : f32 to vector<2x256xf32>
    %30 = arith.subf %28, %29 : vector<2x256xf32>
    %c255_i32_14 = arith.constant 255 : i32
    %31 = tpu.dynamic_rotate %30 by %c255_i32_14 dim 1 : vector<2x256xf32>, i32 -> vector<2x256xf32>
    %c240_i32_15 = arith.constant 240 : i32
    %32 = tpu.dynamic_rotate %30 by %c240_i32_15 dim 1 : vector<2x256xf32>, i32 -> vector<2x256xf32>
    %c239_i32_16 = arith.constant 239 : i32
    %33 = tpu.dynamic_rotate %30 by %c239_i32_16 dim 1 : vector<2x256xf32>, i32 -> vector<2x256xf32>
    %34 = arith.mulf %31, %8 : vector<2x256xf32>
    %35 = arith.subf %30, %34 : vector<2x256xf32>
    %36 = arith.mulf %32, %11 : vector<2x256xf32>
    %37 = arith.subf %35, %36 : vector<2x256xf32>
    %38 = arith.mulf %33, %14 : vector<2x256xf32>
    %39 = arith.addf %37, %38 : vector<2x256xf32>
    %cst_17 = arith.constant 2.500000e-01 : f32
    %40 = vector.broadcast %cst_17 : f32 to vector<2x256xf32>
    %41 = arith.mulf %40, %39 : vector<2x256xf32>
    %42 = arith.subf %5, %3 : vector<2x256xf32>
    %c255_i32_18 = arith.constant 255 : i32
    %43 = tpu.dynamic_rotate %42 by %c255_i32_18 dim 1 : vector<2x256xf32>, i32 -> vector<2x256xf32>
    %c240_i32_19 = arith.constant 240 : i32
    %44 = tpu.dynamic_rotate %42 by %c240_i32_19 dim 1 : vector<2x256xf32>, i32 -> vector<2x256xf32>
    %c239_i32_20 = arith.constant 239 : i32
    %45 = tpu.dynamic_rotate %42 by %c239_i32_20 dim 1 : vector<2x256xf32>, i32 -> vector<2x256xf32>
    %46 = arith.mulf %43, %8 : vector<2x256xf32>
    %47 = arith.subf %42, %46 : vector<2x256xf32>
    %48 = arith.mulf %44, %11 : vector<2x256xf32>
    %49 = arith.subf %47, %48 : vector<2x256xf32>
    %50 = arith.mulf %45, %14 : vector<2x256xf32>
    %51 = arith.addf %49, %50 : vector<2x256xf32>
    %cst_21 = arith.constant 2.500000e-01 : f32
    %52 = vector.broadcast %cst_21 : f32 to vector<2x256xf32>
    %53 = arith.mulf %52, %51 : vector<2x256xf32>
    %c0_22 = arith.constant 0 : index
    %c0_23 = arith.constant 0 : index
    %54 = memref.load %arg3[%c0_22, %c0_23] : memref<6x3xf32, #tpu.memory_space<smem>>
    %55 = vector.broadcast %54 : f32 to vector<2x256xf32>
    %56 = arith.mulf %55, %26 : vector<2x256xf32>
    %c0_24 = arith.constant 0 : index
    %c1_25 = arith.constant 1 : index
    %57 = memref.load %arg3[%c0_24, %c1_25] : memref<6x3xf32, #tpu.memory_space<smem>>
    %58 = vector.broadcast %57 : f32 to vector<2x256xf32>
    %59 = arith.mulf %58, %41 : vector<2x256xf32>
    %60 = arith.addf %56, %59 : vector<2x256xf32>
    %c0_26 = arith.constant 0 : index
    %c2_27 = arith.constant 2 : index
    %61 = memref.load %arg3[%c0_26, %c2_27] : memref<6x3xf32, #tpu.memory_space<smem>>
    %62 = vector.broadcast %61 : f32 to vector<2x256xf32>
    %63 = arith.mulf %62, %53 : vector<2x256xf32>
    %64 = arith.addf %60, %63 : vector<2x256xf32>
    %c0_28 = arith.constant 0 : index
    %65 = memref.load %arg4[%c0_28] : memref<6xf32, #tpu.memory_space<smem>>
    %66 = vector.broadcast %65 : f32 to vector<2x256xf32>
    %67 = arith.addf %64, %66 : vector<2x256xf32>
    %cst_29 = arith.constant -1.000000e+00 : f32
    %cst_30 = arith.constant 1.000000e+00 : f32
    %68 = vector.broadcast %cst_29 : f32 to vector<2x256xf32>
    %69 = arith.maximumf %68, %67 : vector<2x256xf32>
    %70 = vector.broadcast %cst_30 : f32 to vector<2x256xf32>
    %71 = arith.minimumf %70, %69 : vector<2x256xf32>
    %c3 = arith.constant 3 : index
    %c0_31 = arith.constant 0 : index
    %72 = memref.load %arg3[%c3, %c0_31] : memref<6x3xf32, #tpu.memory_space<smem>>
    %73 = vector.broadcast %72 : f32 to vector<2x256xf32>
    %74 = arith.mulf %73, %26 : vector<2x256xf32>
    %c3_32 = arith.constant 3 : index
    %c1_33 = arith.constant 1 : index
    %75 = memref.load %arg3[%c3_32, %c1_33] : memref<6x3xf32, #tpu.memory_space<smem>>
    %76 = vector.broadcast %75 : f32 to vector<2x256xf32>
    %77 = arith.mulf %76, %41 : vector<2x256xf32>
    %78 = arith.addf %74, %77 : vector<2x256xf32>
    %c3_34 = arith.constant 3 : index
    %c2_35 = arith.constant 2 : index
    %79 = memref.load %arg3[%c3_34, %c2_35] : memref<6x3xf32, #tpu.memory_space<smem>>
    %80 = vector.broadcast %79 : f32 to vector<2x256xf32>
    %81 = arith.mulf %80, %53 : vector<2x256xf32>
    %82 = arith.addf %78, %81 : vector<2x256xf32>
    %c3_36 = arith.constant 3 : index
    %83 = memref.load %arg4[%c3_36] : memref<6xf32, #tpu.memory_space<smem>>
    %84 = vector.broadcast %83 : f32 to vector<2x256xf32>
    %85 = arith.addf %82, %84 : vector<2x256xf32>
    %86 = math.absf %85 : vector<2x256xf32>
    %cst_37 = arith.constant 1.100000e+01 : f32
    %87 = vector.broadcast %cst_37 : f32 to vector<2x256xf32>
    %88 = arith.minimumf %86, %87 : vector<2x256xf32>
    %cst_38 = arith.constant 0.693147182 : f32
    %89 = vector.broadcast %cst_38 : f32 to vector<2x256xf32>
    %90 = arith.mulf %88, %89 : vector<2x256xf32>
    %91 = math.exp %90 : vector<2x256xf32>
    %cst_39 = arith.constant 0.001953125 : f32
    %92 = vector.broadcast %cst_39 : f32 to vector<2x256xf32>
    %93 = arith.addf %26, %92 : vector<2x256xf32>
    %94 = arith.subf %93, %71 : vector<2x256xf32>
    %95 = arith.mulf %94, %91 : vector<2x256xf32>
    %cst_40 = arith.constant 0.000000e+00 : f32
    %96 = vector.broadcast %cst_40 : f32 to vector<2x256xf32>
    %97 = arith.cmpf olt, %95, %96 : vector<2x256xf32>
    %cst_41 = arith.constant -1.000000e+00 : f32
    %cst_42 = arith.constant 1.000000e+00 : f32
    %98 = vector.broadcast %cst_41 : f32 to vector<2x256xf32>
    %99 = vector.broadcast %cst_42 : f32 to vector<2x256xf32>
    %100 = arith.select %97, %98, %99 : vector<2x256xi1>, vector<2x256xf32>
    %101 = math.absf %95 : vector<2x256xf32>
    %cst_43 = arith.constant 0.327591091 : f32
    %102 = vector.broadcast %cst_43 : f32 to vector<2x256xf32>
    %103 = arith.mulf %102, %101 : vector<2x256xf32>
    %cst_44 = arith.constant 1.000000e+00 : f32
    %104 = vector.broadcast %cst_44 : f32 to vector<2x256xf32>
    %105 = arith.addf %104, %103 : vector<2x256xf32>
    %106 = tpu.reciprocal %105 {approx = true} : vector<2x256xf32> -> vector<2x256xf32>
    %107 = arith.mulf %105, %106 : vector<2x256xf32>
    %cst_45 = arith.constant 2.000000e+00 : f32
    %108 = vector.broadcast %cst_45 : f32 to vector<2x256xf32>
    %109 = arith.subf %108, %107 : vector<2x256xf32>
    %110 = arith.mulf %106, %109 : vector<2x256xf32>
    %cst_46 = arith.constant 1.06140542 : f32
    %111 = vector.broadcast %cst_46 : f32 to vector<2x256xf32>
    %112 = arith.mulf %111, %110 : vector<2x256xf32>
    %cst_47 = arith.constant -1.45315206 : f32
    %113 = vector.broadcast %cst_47 : f32 to vector<2x256xf32>
    %114 = arith.addf %112, %113 : vector<2x256xf32>
    %115 = arith.mulf %114, %110 : vector<2x256xf32>
    %cst_48 = arith.constant 1.42141378 : f32
    %116 = vector.broadcast %cst_48 : f32 to vector<2x256xf32>
    %117 = arith.addf %115, %116 : vector<2x256xf32>
    %118 = arith.mulf %117, %110 : vector<2x256xf32>
    %cst_49 = arith.constant -0.284496725 : f32
    %119 = vector.broadcast %cst_49 : f32 to vector<2x256xf32>
    %120 = arith.addf %118, %119 : vector<2x256xf32>
    %121 = arith.mulf %120, %110 : vector<2x256xf32>
    %cst_50 = arith.constant 0.254829586 : f32
    %122 = vector.broadcast %cst_50 : f32 to vector<2x256xf32>
    %123 = arith.addf %121, %122 : vector<2x256xf32>
    %124 = arith.mulf %123, %110 : vector<2x256xf32>
    %cst_51 = arith.constant 0.000000e+00 : f32
    %125 = vector.broadcast %cst_51 : f32 to vector<2x256xf32>
    %126 = arith.subf %125, %101 : vector<2x256xf32>
    %127 = arith.mulf %126, %101 : vector<2x256xf32>
    %128 = math.exp %127 : vector<2x256xf32>
    %129 = arith.mulf %124, %128 : vector<2x256xf32>
    %cst_52 = arith.constant 1.000000e+00 : f32
    %130 = vector.broadcast %cst_52 : f32 to vector<2x256xf32>
    %131 = arith.subf %130, %129 : vector<2x256xf32>
    %132 = arith.mulf %100, %131 : vector<2x256xf32>
    %133 = arith.subf %26, %71 : vector<2x256xf32>
    %134 = arith.mulf %133, %91 : vector<2x256xf32>
    %cst_53 = arith.constant 0.000000e+00 : f32
    %135 = vector.broadcast %cst_53 : f32 to vector<2x256xf32>
    %136 = arith.cmpf olt, %134, %135 : vector<2x256xf32>
    %cst_54 = arith.constant -1.000000e+00 : f32
    %cst_55 = arith.constant 1.000000e+00 : f32
    %137 = vector.broadcast %cst_54 : f32 to vector<2x256xf32>
    %138 = vector.broadcast %cst_55 : f32 to vector<2x256xf32>
    %139 = arith.select %136, %137, %138 : vector<2x256xi1>, vector<2x256xf32>
    %140 = math.absf %134 : vector<2x256xf32>
    %cst_56 = arith.constant 0.327591091 : f32
    %141 = vector.broadcast %cst_56 : f32 to vector<2x256xf32>
    %142 = arith.mulf %141, %140 : vector<2x256xf32>
    %cst_57 = arith.constant 1.000000e+00 : f32
    %143 = vector.broadcast %cst_57 : f32 to vector<2x256xf32>
    %144 = arith.addf %143, %142 : vector<2x256xf32>
    %145 = tpu.reciprocal %144 {approx = true} : vector<2x256xf32> -> vector<2x256xf32>
    %146 = arith.mulf %144, %145 : vector<2x256xf32>
    %cst_58 = arith.constant 2.000000e+00 : f32
    %147 = vector.broadcast %cst_58 : f32 to vector<2x256xf32>
    %148 = arith.subf %147, %146 : vector<2x256xf32>
    %149 = arith.mulf %145, %148 : vector<2x256xf32>
    %cst_59 = arith.constant 1.06140542 : f32
    %150 = vector.broadcast %cst_59 : f32 to vector<2x256xf32>
    %151 = arith.mulf %150, %149 : vector<2x256xf32>
    %cst_60 = arith.constant -1.45315206 : f32
    %152 = vector.broadcast %cst_60 : f32 to vector<2x256xf32>
    %153 = arith.addf %151, %152 : vector<2x256xf32>
    %154 = arith.mulf %153, %149 : vector<2x256xf32>
    %cst_61 = arith.constant 1.42141378 : f32
    %155 = vector.broadcast %cst_61 : f32 to vector<2x256xf32>
    %156 = arith.addf %154, %155 : vector<2x256xf32>
    %157 = arith.mulf %156, %149 : vector<2x256xf32>
    %cst_62 = arith.constant -0.284496725 : f32
    %158 = vector.broadcast %cst_62 : f32 to vector<2x256xf32>
    %159 = arith.addf %157, %158 : vector<2x256xf32>
    %160 = arith.mulf %159, %149 : vector<2x256xf32>
    %cst_63 = arith.constant 0.254829586 : f32
    %161 = vector.broadcast %cst_63 : f32 to vector<2x256xf32>
    %162 = arith.addf %160, %161 : vector<2x256xf32>
    %163 = arith.mulf %162, %149 : vector<2x256xf32>
    %cst_64 = arith.constant 0.000000e+00 : f32
    %164 = vector.broadcast %cst_64 : f32 to vector<2x256xf32>
    %165 = arith.subf %164, %140 : vector<2x256xf32>
    %166 = arith.mulf %165, %140 : vector<2x256xf32>
    %167 = math.exp %166 : vector<2x256xf32>
    %168 = arith.mulf %163, %167 : vector<2x256xf32>
    %cst_65 = arith.constant 1.000000e+00 : f32
    %169 = vector.broadcast %cst_65 : f32 to vector<2x256xf32>
    %170 = arith.subf %169, %168 : vector<2x256xf32>
    %171 = arith.mulf %139, %170 : vector<2x256xf32>
    %172 = arith.subf %132, %171 : vector<2x256xf32>
    %cst_66 = arith.constant 4.76837158E-7 : f32
    %173 = vector.broadcast %cst_66 : f32 to vector<2x256xf32>
    %174 = arith.addf %172, %173 : vector<2x256xf32>
    %cst_67 = arith.constant 1.000000e+00 : f32
    %175 = vector.broadcast %cst_67 : f32 to vector<2x256xf32>
    %176 = arith.subf %175, %71 : vector<2x256xf32>
    %177 = arith.mulf %176, %91 : vector<2x256xf32>
    %cst_68 = arith.constant 0.000000e+00 : f32
    %178 = vector.broadcast %cst_68 : f32 to vector<2x256xf32>
    %179 = arith.cmpf olt, %177, %178 : vector<2x256xf32>
    %cst_69 = arith.constant -1.000000e+00 : f32
    %cst_70 = arith.constant 1.000000e+00 : f32
    %180 = vector.broadcast %cst_69 : f32 to vector<2x256xf32>
    %181 = vector.broadcast %cst_70 : f32 to vector<2x256xf32>
    %182 = arith.select %179, %180, %181 : vector<2x256xi1>, vector<2x256xf32>
    %183 = math.absf %177 : vector<2x256xf32>
    %cst_71 = arith.constant 0.327591091 : f32
    %184 = vector.broadcast %cst_71 : f32 to vector<2x256xf32>
    %185 = arith.mulf %184, %183 : vector<2x256xf32>
    %cst_72 = arith.constant 1.000000e+00 : f32
    %186 = vector.broadcast %cst_72 : f32 to vector<2x256xf32>
    %187 = arith.addf %186, %185 : vector<2x256xf32>
    %188 = tpu.reciprocal %187 {approx = true} : vector<2x256xf32> -> vector<2x256xf32>
    %189 = arith.mulf %187, %188 : vector<2x256xf32>
    %cst_73 = arith.constant 2.000000e+00 : f32
    %190 = vector.broadcast %cst_73 : f32 to vector<2x256xf32>
    %191 = arith.subf %190, %189 : vector<2x256xf32>
    %192 = arith.mulf %188, %191 : vector<2x256xf32>
    %cst_74 = arith.constant 1.06140542 : f32
    %193 = vector.broadcast %cst_74 : f32 to vector<2x256xf32>
    %194 = arith.mulf %193, %192 : vector<2x256xf32>
    %cst_75 = arith.constant -1.45315206 : f32
    %195 = vector.broadcast %cst_75 : f32 to vector<2x256xf32>
    %196 = arith.addf %194, %195 : vector<2x256xf32>
    %197 = arith.mulf %196, %192 : vector<2x256xf32>
    %cst_76 = arith.constant 1.42141378 : f32
    %198 = vector.broadcast %cst_76 : f32 to vector<2x256xf32>
    %199 = arith.addf %197, %198 : vector<2x256xf32>
    %200 = arith.mulf %199, %192 : vector<2x256xf32>
    %cst_77 = arith.constant -0.284496725 : f32
    %201 = vector.broadcast %cst_77 : f32 to vector<2x256xf32>
    %202 = arith.addf %200, %201 : vector<2x256xf32>
    %203 = arith.mulf %202, %192 : vector<2x256xf32>
    %cst_78 = arith.constant 0.254829586 : f32
    %204 = vector.broadcast %cst_78 : f32 to vector<2x256xf32>
    %205 = arith.addf %203, %204 : vector<2x256xf32>
    %206 = arith.mulf %205, %192 : vector<2x256xf32>
    %cst_79 = arith.constant 0.000000e+00 : f32
    %207 = vector.broadcast %cst_79 : f32 to vector<2x256xf32>
    %208 = arith.subf %207, %183 : vector<2x256xf32>
    %209 = arith.mulf %208, %183 : vector<2x256xf32>
    %210 = math.exp %209 : vector<2x256xf32>
    %211 = arith.mulf %206, %210 : vector<2x256xf32>
    %cst_80 = arith.constant 1.000000e+00 : f32
    %212 = vector.broadcast %cst_80 : f32 to vector<2x256xf32>
    %213 = arith.subf %212, %211 : vector<2x256xf32>
    %214 = arith.mulf %182, %213 : vector<2x256xf32>
    %cst_81 = arith.constant -1.000000e+00 : f32
    %215 = vector.broadcast %cst_81 : f32 to vector<2x256xf32>
    %216 = arith.subf %215, %71 : vector<2x256xf32>
    %217 = arith.mulf %216, %91 : vector<2x256xf32>
    %cst_82 = arith.constant 0.000000e+00 : f32
    %218 = vector.broadcast %cst_82 : f32 to vector<2x256xf32>
    %219 = arith.cmpf olt, %217, %218 : vector<2x256xf32>
    %cst_83 = arith.constant -1.000000e+00 : f32
    %cst_84 = arith.constant 1.000000e+00 : f32
    %220 = vector.broadcast %cst_83 : f32 to vector<2x256xf32>
    %221 = vector.broadcast %cst_84 : f32 to vector<2x256xf32>
    %222 = arith.select %219, %220, %221 : vector<2x256xi1>, vector<2x256xf32>
    %223 = math.absf %217 : vector<2x256xf32>
    %cst_85 = arith.constant 0.327591091 : f32
    %224 = vector.broadcast %cst_85 : f32 to vector<2x256xf32>
    %225 = arith.mulf %224, %223 : vector<2x256xf32>
    %cst_86 = arith.constant 1.000000e+00 : f32
    %226 = vector.broadcast %cst_86 : f32 to vector<2x256xf32>
    %227 = arith.addf %226, %225 : vector<2x256xf32>
    %228 = tpu.reciprocal %227 {approx = true} : vector<2x256xf32> -> vector<2x256xf32>
    %229 = arith.mulf %227, %228 : vector<2x256xf32>
    %cst_87 = arith.constant 2.000000e+00 : f32
    %230 = vector.broadcast %cst_87 : f32 to vector<2x256xf32>
    %231 = arith.subf %230, %229 : vector<2x256xf32>
    %232 = arith.mulf %228, %231 : vector<2x256xf32>
    %cst_88 = arith.constant 1.06140542 : f32
    %233 = vector.broadcast %cst_88 : f32 to vector<2x256xf32>
    %234 = arith.mulf %233, %232 : vector<2x256xf32>
    %cst_89 = arith.constant -1.45315206 : f32
    %235 = vector.broadcast %cst_89 : f32 to vector<2x256xf32>
    %236 = arith.addf %234, %235 : vector<2x256xf32>
    %237 = arith.mulf %236, %232 : vector<2x256xf32>
    %cst_90 = arith.constant 1.42141378 : f32
    %238 = vector.broadcast %cst_90 : f32 to vector<2x256xf32>
    %239 = arith.addf %237, %238 : vector<2x256xf32>
    %240 = arith.mulf %239, %232 : vector<2x256xf32>
    %cst_91 = arith.constant -0.284496725 : f32
    %241 = vector.broadcast %cst_91 : f32 to vector<2x256xf32>
    %242 = arith.addf %240, %241 : vector<2x256xf32>
    %243 = arith.mulf %242, %232 : vector<2x256xf32>
    %cst_92 = arith.constant 0.254829586 : f32
    %244 = vector.broadcast %cst_92 : f32 to vector<2x256xf32>
    %245 = arith.addf %243, %244 : vector<2x256xf32>
    %246 = arith.mulf %245, %232 : vector<2x256xf32>
    %cst_93 = arith.constant 0.000000e+00 : f32
    %247 = vector.broadcast %cst_93 : f32 to vector<2x256xf32>
    %248 = arith.subf %247, %223 : vector<2x256xf32>
    %249 = arith.mulf %248, %223 : vector<2x256xf32>
    %250 = math.exp %249 : vector<2x256xf32>
    %251 = arith.mulf %246, %250 : vector<2x256xf32>
    %cst_94 = arith.constant 1.000000e+00 : f32
    %252 = vector.broadcast %cst_94 : f32 to vector<2x256xf32>
    %253 = arith.subf %252, %251 : vector<2x256xf32>
    %254 = arith.mulf %222, %253 : vector<2x256xf32>
    %255 = arith.subf %214, %254 : vector<2x256xf32>
    %cst_95 = arith.constant 4.8828125E-4 : f32
    %256 = vector.broadcast %cst_95 : f32 to vector<2x256xf32>
    %257 = arith.addf %255, %256 : vector<2x256xf32>
    %258 = tpu.reciprocal %257 {approx = true} : vector<2x256xf32> -> vector<2x256xf32>
    %259 = arith.mulf %174, %258 : vector<2x256xf32>
    %260 = math.log %259 : vector<2x256xf32>
    %cst_96 = arith.constant 0.000000e+00 : f32
    %261 = vector.broadcast %cst_96 : f32 to vector<2x256xf32>
    %262 = arith.subf %261, %260 : vector<2x256xf32>
    %cst_97 = arith.constant 1.44269502 : f32
    %263 = vector.broadcast %cst_97 : f32 to vector<2x256xf32>
    %264 = arith.mulf %262, %263 : vector<2x256xf32>
    %c1_98 = arith.constant 1 : index
    %c0_99 = arith.constant 0 : index
    %265 = memref.load %arg3[%c1_98, %c0_99] : memref<6x3xf32, #tpu.memory_space<smem>>
    %266 = vector.broadcast %265 : f32 to vector<2x256xf32>
    %267 = arith.mulf %266, %26 : vector<2x256xf32>
    %c1_100 = arith.constant 1 : index
    %c1_101 = arith.constant 1 : index
    %268 = memref.load %arg3[%c1_100, %c1_101] : memref<6x3xf32, #tpu.memory_space<smem>>
    %269 = vector.broadcast %268 : f32 to vector<2x256xf32>
    %270 = arith.mulf %269, %41 : vector<2x256xf32>
    %271 = arith.addf %267, %270 : vector<2x256xf32>
    %c1_102 = arith.constant 1 : index
    %c2_103 = arith.constant 2 : index
    %272 = memref.load %arg3[%c1_102, %c2_103] : memref<6x3xf32, #tpu.memory_space<smem>>
    %273 = vector.broadcast %272 : f32 to vector<2x256xf32>
    %274 = arith.mulf %273, %53 : vector<2x256xf32>
    %275 = arith.addf %271, %274 : vector<2x256xf32>
    %c1_104 = arith.constant 1 : index
    %276 = memref.load %arg4[%c1_104] : memref<6xf32, #tpu.memory_space<smem>>
    %277 = vector.broadcast %276 : f32 to vector<2x256xf32>
    %278 = arith.addf %275, %277 : vector<2x256xf32>
    %cst_105 = arith.constant -1.000000e+00 : f32
    %cst_106 = arith.constant 1.000000e+00 : f32
    %279 = vector.broadcast %cst_105 : f32 to vector<2x256xf32>
    %280 = arith.maximumf %279, %278 : vector<2x256xf32>
    %281 = vector.broadcast %cst_106 : f32 to vector<2x256xf32>
    %282 = arith.minimumf %281, %280 : vector<2x256xf32>
    %c4 = arith.constant 4 : index
    %c0_107 = arith.constant 0 : index
    %283 = memref.load %arg3[%c4, %c0_107] : memref<6x3xf32, #tpu.memory_space<smem>>
    %284 = vector.broadcast %283 : f32 to vector<2x256xf32>
    %285 = arith.mulf %284, %26 : vector<2x256xf32>
    %c4_108 = arith.constant 4 : index
    %c1_109 = arith.constant 1 : index
    %286 = memref.load %arg3[%c4_108, %c1_109] : memref<6x3xf32, #tpu.memory_space<smem>>
    %287 = vector.broadcast %286 : f32 to vector<2x256xf32>
    %288 = arith.mulf %287, %41 : vector<2x256xf32>
    %289 = arith.addf %285, %288 : vector<2x256xf32>
    %c4_110 = arith.constant 4 : index
    %c2_111 = arith.constant 2 : index
    %290 = memref.load %arg3[%c4_110, %c2_111] : memref<6x3xf32, #tpu.memory_space<smem>>
    %291 = vector.broadcast %290 : f32 to vector<2x256xf32>
    %292 = arith.mulf %291, %53 : vector<2x256xf32>
    %293 = arith.addf %289, %292 : vector<2x256xf32>
    %c4_112 = arith.constant 4 : index
    %294 = memref.load %arg4[%c4_112] : memref<6xf32, #tpu.memory_space<smem>>
    %295 = vector.broadcast %294 : f32 to vector<2x256xf32>
    %296 = arith.addf %293, %295 : vector<2x256xf32>
    %297 = math.absf %296 : vector<2x256xf32>
    %cst_113 = arith.constant 1.100000e+01 : f32
    %298 = vector.broadcast %cst_113 : f32 to vector<2x256xf32>
    %299 = arith.minimumf %297, %298 : vector<2x256xf32>
    %cst_114 = arith.constant 0.693147182 : f32
    %300 = vector.broadcast %cst_114 : f32 to vector<2x256xf32>
    %301 = arith.mulf %299, %300 : vector<2x256xf32>
    %302 = math.exp %301 : vector<2x256xf32>
    %cst_115 = arith.constant 3.906250e-03 : f32
    %303 = vector.broadcast %cst_115 : f32 to vector<2x256xf32>
    %304 = arith.addf %41, %303 : vector<2x256xf32>
    %305 = arith.subf %304, %282 : vector<2x256xf32>
    %306 = arith.mulf %305, %302 : vector<2x256xf32>
    %cst_116 = arith.constant 0.000000e+00 : f32
    %307 = vector.broadcast %cst_116 : f32 to vector<2x256xf32>
    %308 = arith.cmpf olt, %306, %307 : vector<2x256xf32>
    %cst_117 = arith.constant -1.000000e+00 : f32
    %cst_118 = arith.constant 1.000000e+00 : f32
    %309 = vector.broadcast %cst_117 : f32 to vector<2x256xf32>
    %310 = vector.broadcast %cst_118 : f32 to vector<2x256xf32>
    %311 = arith.select %308, %309, %310 : vector<2x256xi1>, vector<2x256xf32>
    %312 = math.absf %306 : vector<2x256xf32>
    %cst_119 = arith.constant 0.327591091 : f32
    %313 = vector.broadcast %cst_119 : f32 to vector<2x256xf32>
    %314 = arith.mulf %313, %312 : vector<2x256xf32>
    %cst_120 = arith.constant 1.000000e+00 : f32
    %315 = vector.broadcast %cst_120 : f32 to vector<2x256xf32>
    %316 = arith.addf %315, %314 : vector<2x256xf32>
    %317 = tpu.reciprocal %316 {approx = true} : vector<2x256xf32> -> vector<2x256xf32>
    %318 = arith.mulf %316, %317 : vector<2x256xf32>
    %cst_121 = arith.constant 2.000000e+00 : f32
    %319 = vector.broadcast %cst_121 : f32 to vector<2x256xf32>
    %320 = arith.subf %319, %318 : vector<2x256xf32>
    %321 = arith.mulf %317, %320 : vector<2x256xf32>
    %cst_122 = arith.constant 1.06140542 : f32
    %322 = vector.broadcast %cst_122 : f32 to vector<2x256xf32>
    %323 = arith.mulf %322, %321 : vector<2x256xf32>
    %cst_123 = arith.constant -1.45315206 : f32
    %324 = vector.broadcast %cst_123 : f32 to vector<2x256xf32>
    %325 = arith.addf %323, %324 : vector<2x256xf32>
    %326 = arith.mulf %325, %321 : vector<2x256xf32>
    %cst_124 = arith.constant 1.42141378 : f32
    %327 = vector.broadcast %cst_124 : f32 to vector<2x256xf32>
    %328 = arith.addf %326, %327 : vector<2x256xf32>
    %329 = arith.mulf %328, %321 : vector<2x256xf32>
    %cst_125 = arith.constant -0.284496725 : f32
    %330 = vector.broadcast %cst_125 : f32 to vector<2x256xf32>
    %331 = arith.addf %329, %330 : vector<2x256xf32>
    %332 = arith.mulf %331, %321 : vector<2x256xf32>
    %cst_126 = arith.constant 0.254829586 : f32
    %333 = vector.broadcast %cst_126 : f32 to vector<2x256xf32>
    %334 = arith.addf %332, %333 : vector<2x256xf32>
    %335 = arith.mulf %334, %321 : vector<2x256xf32>
    %cst_127 = arith.constant 0.000000e+00 : f32
    %336 = vector.broadcast %cst_127 : f32 to vector<2x256xf32>
    %337 = arith.subf %336, %312 : vector<2x256xf32>
    %338 = arith.mulf %337, %312 : vector<2x256xf32>
    %339 = math.exp %338 : vector<2x256xf32>
    %340 = arith.mulf %335, %339 : vector<2x256xf32>
    %cst_128 = arith.constant 1.000000e+00 : f32
    %341 = vector.broadcast %cst_128 : f32 to vector<2x256xf32>
    %342 = arith.subf %341, %340 : vector<2x256xf32>
    %343 = arith.mulf %311, %342 : vector<2x256xf32>
    %344 = arith.subf %41, %282 : vector<2x256xf32>
    %345 = arith.mulf %344, %302 : vector<2x256xf32>
    %cst_129 = arith.constant 0.000000e+00 : f32
    %346 = vector.broadcast %cst_129 : f32 to vector<2x256xf32>
    %347 = arith.cmpf olt, %345, %346 : vector<2x256xf32>
    %cst_130 = arith.constant -1.000000e+00 : f32
    %cst_131 = arith.constant 1.000000e+00 : f32
    %348 = vector.broadcast %cst_130 : f32 to vector<2x256xf32>
    %349 = vector.broadcast %cst_131 : f32 to vector<2x256xf32>
    %350 = arith.select %347, %348, %349 : vector<2x256xi1>, vector<2x256xf32>
    %351 = math.absf %345 : vector<2x256xf32>
    %cst_132 = arith.constant 0.327591091 : f32
    %352 = vector.broadcast %cst_132 : f32 to vector<2x256xf32>
    %353 = arith.mulf %352, %351 : vector<2x256xf32>
    %cst_133 = arith.constant 1.000000e+00 : f32
    %354 = vector.broadcast %cst_133 : f32 to vector<2x256xf32>
    %355 = arith.addf %354, %353 : vector<2x256xf32>
    %356 = tpu.reciprocal %355 {approx = true} : vector<2x256xf32> -> vector<2x256xf32>
    %357 = arith.mulf %355, %356 : vector<2x256xf32>
    %cst_134 = arith.constant 2.000000e+00 : f32
    %358 = vector.broadcast %cst_134 : f32 to vector<2x256xf32>
    %359 = arith.subf %358, %357 : vector<2x256xf32>
    %360 = arith.mulf %356, %359 : vector<2x256xf32>
    %cst_135 = arith.constant 1.06140542 : f32
    %361 = vector.broadcast %cst_135 : f32 to vector<2x256xf32>
    %362 = arith.mulf %361, %360 : vector<2x256xf32>
    %cst_136 = arith.constant -1.45315206 : f32
    %363 = vector.broadcast %cst_136 : f32 to vector<2x256xf32>
    %364 = arith.addf %362, %363 : vector<2x256xf32>
    %365 = arith.mulf %364, %360 : vector<2x256xf32>
    %cst_137 = arith.constant 1.42141378 : f32
    %366 = vector.broadcast %cst_137 : f32 to vector<2x256xf32>
    %367 = arith.addf %365, %366 : vector<2x256xf32>
    %368 = arith.mulf %367, %360 : vector<2x256xf32>
    %cst_138 = arith.constant -0.284496725 : f32
    %369 = vector.broadcast %cst_138 : f32 to vector<2x256xf32>
    %370 = arith.addf %368, %369 : vector<2x256xf32>
    %371 = arith.mulf %370, %360 : vector<2x256xf32>
    %cst_139 = arith.constant 0.254829586 : f32
    %372 = vector.broadcast %cst_139 : f32 to vector<2x256xf32>
    %373 = arith.addf %371, %372 : vector<2x256xf32>
    %374 = arith.mulf %373, %360 : vector<2x256xf32>
    %cst_140 = arith.constant 0.000000e+00 : f32
    %375 = vector.broadcast %cst_140 : f32 to vector<2x256xf32>
    %376 = arith.subf %375, %351 : vector<2x256xf32>
    %377 = arith.mulf %376, %351 : vector<2x256xf32>
    %378 = math.exp %377 : vector<2x256xf32>
    %379 = arith.mulf %374, %378 : vector<2x256xf32>
    %cst_141 = arith.constant 1.000000e+00 : f32
    %380 = vector.broadcast %cst_141 : f32 to vector<2x256xf32>
    %381 = arith.subf %380, %379 : vector<2x256xf32>
    %382 = arith.mulf %350, %381 : vector<2x256xf32>
    %383 = arith.subf %343, %382 : vector<2x256xf32>
    %cst_142 = arith.constant 9.53674316E-7 : f32
    %384 = vector.broadcast %cst_142 : f32 to vector<2x256xf32>
    %385 = arith.addf %383, %384 : vector<2x256xf32>
    %cst_143 = arith.constant 1.000000e+00 : f32
    %386 = vector.broadcast %cst_143 : f32 to vector<2x256xf32>
    %387 = arith.subf %386, %282 : vector<2x256xf32>
    %388 = arith.mulf %387, %302 : vector<2x256xf32>
    %cst_144 = arith.constant 0.000000e+00 : f32
    %389 = vector.broadcast %cst_144 : f32 to vector<2x256xf32>
    %390 = arith.cmpf olt, %388, %389 : vector<2x256xf32>
    %cst_145 = arith.constant -1.000000e+00 : f32
    %cst_146 = arith.constant 1.000000e+00 : f32
    %391 = vector.broadcast %cst_145 : f32 to vector<2x256xf32>
    %392 = vector.broadcast %cst_146 : f32 to vector<2x256xf32>
    %393 = arith.select %390, %391, %392 : vector<2x256xi1>, vector<2x256xf32>
    %394 = math.absf %388 : vector<2x256xf32>
    %cst_147 = arith.constant 0.327591091 : f32
    %395 = vector.broadcast %cst_147 : f32 to vector<2x256xf32>
    %396 = arith.mulf %395, %394 : vector<2x256xf32>
    %cst_148 = arith.constant 1.000000e+00 : f32
    %397 = vector.broadcast %cst_148 : f32 to vector<2x256xf32>
    %398 = arith.addf %397, %396 : vector<2x256xf32>
    %399 = tpu.reciprocal %398 {approx = true} : vector<2x256xf32> -> vector<2x256xf32>
    %400 = arith.mulf %398, %399 : vector<2x256xf32>
    %cst_149 = arith.constant 2.000000e+00 : f32
    %401 = vector.broadcast %cst_149 : f32 to vector<2x256xf32>
    %402 = arith.subf %401, %400 : vector<2x256xf32>
    %403 = arith.mulf %399, %402 : vector<2x256xf32>
    %cst_150 = arith.constant 1.06140542 : f32
    %404 = vector.broadcast %cst_150 : f32 to vector<2x256xf32>
    %405 = arith.mulf %404, %403 : vector<2x256xf32>
    %cst_151 = arith.constant -1.45315206 : f32
    %406 = vector.broadcast %cst_151 : f32 to vector<2x256xf32>
    %407 = arith.addf %405, %406 : vector<2x256xf32>
    %408 = arith.mulf %407, %403 : vector<2x256xf32>
    %cst_152 = arith.constant 1.42141378 : f32
    %409 = vector.broadcast %cst_152 : f32 to vector<2x256xf32>
    %410 = arith.addf %408, %409 : vector<2x256xf32>
    %411 = arith.mulf %410, %403 : vector<2x256xf32>
    %cst_153 = arith.constant -0.284496725 : f32
    %412 = vector.broadcast %cst_153 : f32 to vector<2x256xf32>
    %413 = arith.addf %411, %412 : vector<2x256xf32>
    %414 = arith.mulf %413, %403 : vector<2x256xf32>
    %cst_154 = arith.constant 0.254829586 : f32
    %415 = vector.broadcast %cst_154 : f32 to vector<2x256xf32>
    %416 = arith.addf %414, %415 : vector<2x256xf32>
    %417 = arith.mulf %416, %403 : vector<2x256xf32>
    %cst_155 = arith.constant 0.000000e+00 : f32
    %418 = vector.broadcast %cst_155 : f32 to vector<2x256xf32>
    %419 = arith.subf %418, %394 : vector<2x256xf32>
    %420 = arith.mulf %419, %394 : vector<2x256xf32>
    %421 = math.exp %420 : vector<2x256xf32>
    %422 = arith.mulf %417, %421 : vector<2x256xf32>
    %cst_156 = arith.constant 1.000000e+00 : f32
    %423 = vector.broadcast %cst_156 : f32 to vector<2x256xf32>
    %424 = arith.subf %423, %422 : vector<2x256xf32>
    %425 = arith.mulf %393, %424 : vector<2x256xf32>
    %cst_157 = arith.constant -1.000000e+00 : f32
    %426 = vector.broadcast %cst_157 : f32 to vector<2x256xf32>
    %427 = arith.subf %426, %282 : vector<2x256xf32>
    %428 = arith.mulf %427, %302 : vector<2x256xf32>
    %cst_158 = arith.constant 0.000000e+00 : f32
    %429 = vector.broadcast %cst_158 : f32 to vector<2x256xf32>
    %430 = arith.cmpf olt, %428, %429 : vector<2x256xf32>
    %cst_159 = arith.constant -1.000000e+00 : f32
    %cst_160 = arith.constant 1.000000e+00 : f32
    %431 = vector.broadcast %cst_159 : f32 to vector<2x256xf32>
    %432 = vector.broadcast %cst_160 : f32 to vector<2x256xf32>
    %433 = arith.select %430, %431, %432 : vector<2x256xi1>, vector<2x256xf32>
    %434 = math.absf %428 : vector<2x256xf32>
    %cst_161 = arith.constant 0.327591091 : f32
    %435 = vector.broadcast %cst_161 : f32 to vector<2x256xf32>
    %436 = arith.mulf %435, %434 : vector<2x256xf32>
    %cst_162 = arith.constant 1.000000e+00 : f32
    %437 = vector.broadcast %cst_162 : f32 to vector<2x256xf32>
    %438 = arith.addf %437, %436 : vector<2x256xf32>
    %439 = tpu.reciprocal %438 {approx = true} : vector<2x256xf32> -> vector<2x256xf32>
    %440 = arith.mulf %438, %439 : vector<2x256xf32>
    %cst_163 = arith.constant 2.000000e+00 : f32
    %441 = vector.broadcast %cst_163 : f32 to vector<2x256xf32>
    %442 = arith.subf %441, %440 : vector<2x256xf32>
    %443 = arith.mulf %439, %442 : vector<2x256xf32>
    %cst_164 = arith.constant 1.06140542 : f32
    %444 = vector.broadcast %cst_164 : f32 to vector<2x256xf32>
    %445 = arith.mulf %444, %443 : vector<2x256xf32>
    %cst_165 = arith.constant -1.45315206 : f32
    %446 = vector.broadcast %cst_165 : f32 to vector<2x256xf32>
    %447 = arith.addf %445, %446 : vector<2x256xf32>
    %448 = arith.mulf %447, %443 : vector<2x256xf32>
    %cst_166 = arith.constant 1.42141378 : f32
    %449 = vector.broadcast %cst_166 : f32 to vector<2x256xf32>
    %450 = arith.addf %448, %449 : vector<2x256xf32>
    %451 = arith.mulf %450, %443 : vector<2x256xf32>
    %cst_167 = arith.constant -0.284496725 : f32
    %452 = vector.broadcast %cst_167 : f32 to vector<2x256xf32>
    %453 = arith.addf %451, %452 : vector<2x256xf32>
    %454 = arith.mulf %453, %443 : vector<2x256xf32>
    %cst_168 = arith.constant 0.254829586 : f32
    %455 = vector.broadcast %cst_168 : f32 to vector<2x256xf32>
    %456 = arith.addf %454, %455 : vector<2x256xf32>
    %457 = arith.mulf %456, %443 : vector<2x256xf32>
    %cst_169 = arith.constant 0.000000e+00 : f32
    %458 = vector.broadcast %cst_169 : f32 to vector<2x256xf32>
    %459 = arith.subf %458, %434 : vector<2x256xf32>
    %460 = arith.mulf %459, %434 : vector<2x256xf32>
    %461 = math.exp %460 : vector<2x256xf32>
    %462 = arith.mulf %457, %461 : vector<2x256xf32>
    %cst_170 = arith.constant 1.000000e+00 : f32
    %463 = vector.broadcast %cst_170 : f32 to vector<2x256xf32>
    %464 = arith.subf %463, %462 : vector<2x256xf32>
    %465 = arith.mulf %433, %464 : vector<2x256xf32>
    %466 = arith.subf %425, %465 : vector<2x256xf32>
    %cst_171 = arith.constant 4.8828125E-4 : f32
    %467 = vector.broadcast %cst_171 : f32 to vector<2x256xf32>
    %468 = arith.addf %466, %467 : vector<2x256xf32>
    %469 = tpu.reciprocal %468 {approx = true} : vector<2x256xf32> -> vector<2x256xf32>
    %470 = arith.mulf %385, %469 : vector<2x256xf32>
    %471 = math.log %470 : vector<2x256xf32>
    %cst_172 = arith.constant 0.000000e+00 : f32
    %472 = vector.broadcast %cst_172 : f32 to vector<2x256xf32>
    %473 = arith.subf %472, %471 : vector<2x256xf32>
    %cst_173 = arith.constant 1.44269502 : f32
    %474 = vector.broadcast %cst_173 : f32 to vector<2x256xf32>
    %475 = arith.mulf %473, %474 : vector<2x256xf32>
    %476 = arith.addf %264, %475 : vector<2x256xf32>
    %c2_174 = arith.constant 2 : index
    %c0_175 = arith.constant 0 : index
    %477 = memref.load %arg3[%c2_174, %c0_175] : memref<6x3xf32, #tpu.memory_space<smem>>
    %478 = vector.broadcast %477 : f32 to vector<2x256xf32>
    %479 = arith.mulf %478, %26 : vector<2x256xf32>
    %c2_176 = arith.constant 2 : index
    %c1_177 = arith.constant 1 : index
    %480 = memref.load %arg3[%c2_176, %c1_177] : memref<6x3xf32, #tpu.memory_space<smem>>
    %481 = vector.broadcast %480 : f32 to vector<2x256xf32>
    %482 = arith.mulf %481, %41 : vector<2x256xf32>
    %483 = arith.addf %479, %482 : vector<2x256xf32>
    %c2_178 = arith.constant 2 : index
    %c2_179 = arith.constant 2 : index
    %484 = memref.load %arg3[%c2_178, %c2_179] : memref<6x3xf32, #tpu.memory_space<smem>>
    %485 = vector.broadcast %484 : f32 to vector<2x256xf32>
    %486 = arith.mulf %485, %53 : vector<2x256xf32>
    %487 = arith.addf %483, %486 : vector<2x256xf32>
    %c2_180 = arith.constant 2 : index
    %488 = memref.load %arg4[%c2_180] : memref<6xf32, #tpu.memory_space<smem>>
    %489 = vector.broadcast %488 : f32 to vector<2x256xf32>
    %490 = arith.addf %487, %489 : vector<2x256xf32>
    %cst_181 = arith.constant -1.000000e+00 : f32
    %cst_182 = arith.constant 1.000000e+00 : f32
    %491 = vector.broadcast %cst_181 : f32 to vector<2x256xf32>
    %492 = arith.maximumf %491, %490 : vector<2x256xf32>
    %493 = vector.broadcast %cst_182 : f32 to vector<2x256xf32>
    %494 = arith.minimumf %493, %492 : vector<2x256xf32>
    %c5 = arith.constant 5 : index
    %c0_183 = arith.constant 0 : index
    %495 = memref.load %arg3[%c5, %c0_183] : memref<6x3xf32, #tpu.memory_space<smem>>
    %496 = vector.broadcast %495 : f32 to vector<2x256xf32>
    %497 = arith.mulf %496, %26 : vector<2x256xf32>
    %c5_184 = arith.constant 5 : index
    %c1_185 = arith.constant 1 : index
    %498 = memref.load %arg3[%c5_184, %c1_185] : memref<6x3xf32, #tpu.memory_space<smem>>
    %499 = vector.broadcast %498 : f32 to vector<2x256xf32>
    %500 = arith.mulf %499, %41 : vector<2x256xf32>
    %501 = arith.addf %497, %500 : vector<2x256xf32>
    %c5_186 = arith.constant 5 : index
    %c2_187 = arith.constant 2 : index
    %502 = memref.load %arg3[%c5_186, %c2_187] : memref<6x3xf32, #tpu.memory_space<smem>>
    %503 = vector.broadcast %502 : f32 to vector<2x256xf32>
    %504 = arith.mulf %503, %53 : vector<2x256xf32>
    %505 = arith.addf %501, %504 : vector<2x256xf32>
    %c5_188 = arith.constant 5 : index
    %506 = memref.load %arg4[%c5_188] : memref<6xf32, #tpu.memory_space<smem>>
    %507 = vector.broadcast %506 : f32 to vector<2x256xf32>
    %508 = arith.addf %505, %507 : vector<2x256xf32>
    %509 = math.absf %508 : vector<2x256xf32>
    %cst_189 = arith.constant 1.100000e+01 : f32
    %510 = vector.broadcast %cst_189 : f32 to vector<2x256xf32>
    %511 = arith.minimumf %509, %510 : vector<2x256xf32>
    %cst_190 = arith.constant 0.693147182 : f32
    %512 = vector.broadcast %cst_190 : f32 to vector<2x256xf32>
    %513 = arith.mulf %511, %512 : vector<2x256xf32>
    %514 = math.exp %513 : vector<2x256xf32>
    %cst_191 = arith.constant 0.001953125 : f32
    %515 = vector.broadcast %cst_191 : f32 to vector<2x256xf32>
    %516 = arith.addf %53, %515 : vector<2x256xf32>
    %517 = arith.subf %516, %494 : vector<2x256xf32>
    %518 = arith.mulf %517, %514 : vector<2x256xf32>
    %cst_192 = arith.constant 0.000000e+00 : f32
    %519 = vector.broadcast %cst_192 : f32 to vector<2x256xf32>
    %520 = arith.cmpf olt, %518, %519 : vector<2x256xf32>
    %cst_193 = arith.constant -1.000000e+00 : f32
    %cst_194 = arith.constant 1.000000e+00 : f32
    %521 = vector.broadcast %cst_193 : f32 to vector<2x256xf32>
    %522 = vector.broadcast %cst_194 : f32 to vector<2x256xf32>
    %523 = arith.select %520, %521, %522 : vector<2x256xi1>, vector<2x256xf32>
    %524 = math.absf %518 : vector<2x256xf32>
    %cst_195 = arith.constant 0.327591091 : f32
    %525 = vector.broadcast %cst_195 : f32 to vector<2x256xf32>
    %526 = arith.mulf %525, %524 : vector<2x256xf32>
    %cst_196 = arith.constant 1.000000e+00 : f32
    %527 = vector.broadcast %cst_196 : f32 to vector<2x256xf32>
    %528 = arith.addf %527, %526 : vector<2x256xf32>
    %529 = tpu.reciprocal %528 {approx = true} : vector<2x256xf32> -> vector<2x256xf32>
    %530 = arith.mulf %528, %529 : vector<2x256xf32>
    %cst_197 = arith.constant 2.000000e+00 : f32
    %531 = vector.broadcast %cst_197 : f32 to vector<2x256xf32>
    %532 = arith.subf %531, %530 : vector<2x256xf32>
    %533 = arith.mulf %529, %532 : vector<2x256xf32>
    %cst_198 = arith.constant 1.06140542 : f32
    %534 = vector.broadcast %cst_198 : f32 to vector<2x256xf32>
    %535 = arith.mulf %534, %533 : vector<2x256xf32>
    %cst_199 = arith.constant -1.45315206 : f32
    %536 = vector.broadcast %cst_199 : f32 to vector<2x256xf32>
    %537 = arith.addf %535, %536 : vector<2x256xf32>
    %538 = arith.mulf %537, %533 : vector<2x256xf32>
    %cst_200 = arith.constant 1.42141378 : f32
    %539 = vector.broadcast %cst_200 : f32 to vector<2x256xf32>
    %540 = arith.addf %538, %539 : vector<2x256xf32>
    %541 = arith.mulf %540, %533 : vector<2x256xf32>
    %cst_201 = arith.constant -0.284496725 : f32
    %542 = vector.broadcast %cst_201 : f32 to vector<2x256xf32>
    %543 = arith.addf %541, %542 : vector<2x256xf32>
    %544 = arith.mulf %543, %533 : vector<2x256xf32>
    %cst_202 = arith.constant 0.254829586 : f32
    %545 = vector.broadcast %cst_202 : f32 to vector<2x256xf32>
    %546 = arith.addf %544, %545 : vector<2x256xf32>
    %547 = arith.mulf %546, %533 : vector<2x256xf32>
    %cst_203 = arith.constant 0.000000e+00 : f32
    %548 = vector.broadcast %cst_203 : f32 to vector<2x256xf32>
    %549 = arith.subf %548, %524 : vector<2x256xf32>
    %550 = arith.mulf %549, %524 : vector<2x256xf32>
    %551 = math.exp %550 : vector<2x256xf32>
    %552 = arith.mulf %547, %551 : vector<2x256xf32>
    %cst_204 = arith.constant 1.000000e+00 : f32
    %553 = vector.broadcast %cst_204 : f32 to vector<2x256xf32>
    %554 = arith.subf %553, %552 : vector<2x256xf32>
    %555 = arith.mulf %523, %554 : vector<2x256xf32>
    %556 = arith.subf %53, %494 : vector<2x256xf32>
    %557 = arith.mulf %556, %514 : vector<2x256xf32>
    %cst_205 = arith.constant 0.000000e+00 : f32
    %558 = vector.broadcast %cst_205 : f32 to vector<2x256xf32>
    %559 = arith.cmpf olt, %557, %558 : vector<2x256xf32>
    %cst_206 = arith.constant -1.000000e+00 : f32
    %cst_207 = arith.constant 1.000000e+00 : f32
    %560 = vector.broadcast %cst_206 : f32 to vector<2x256xf32>
    %561 = vector.broadcast %cst_207 : f32 to vector<2x256xf32>
    %562 = arith.select %559, %560, %561 : vector<2x256xi1>, vector<2x256xf32>
    %563 = math.absf %557 : vector<2x256xf32>
    %cst_208 = arith.constant 0.327591091 : f32
    %564 = vector.broadcast %cst_208 : f32 to vector<2x256xf32>
    %565 = arith.mulf %564, %563 : vector<2x256xf32>
    %cst_209 = arith.constant 1.000000e+00 : f32
    %566 = vector.broadcast %cst_209 : f32 to vector<2x256xf32>
    %567 = arith.addf %566, %565 : vector<2x256xf32>
    %568 = tpu.reciprocal %567 {approx = true} : vector<2x256xf32> -> vector<2x256xf32>
    %569 = arith.mulf %567, %568 : vector<2x256xf32>
    %cst_210 = arith.constant 2.000000e+00 : f32
    %570 = vector.broadcast %cst_210 : f32 to vector<2x256xf32>
    %571 = arith.subf %570, %569 : vector<2x256xf32>
    %572 = arith.mulf %568, %571 : vector<2x256xf32>
    %cst_211 = arith.constant 1.06140542 : f32
    %573 = vector.broadcast %cst_211 : f32 to vector<2x256xf32>
    %574 = arith.mulf %573, %572 : vector<2x256xf32>
    %cst_212 = arith.constant -1.45315206 : f32
    %575 = vector.broadcast %cst_212 : f32 to vector<2x256xf32>
    %576 = arith.addf %574, %575 : vector<2x256xf32>
    %577 = arith.mulf %576, %572 : vector<2x256xf32>
    %cst_213 = arith.constant 1.42141378 : f32
    %578 = vector.broadcast %cst_213 : f32 to vector<2x256xf32>
    %579 = arith.addf %577, %578 : vector<2x256xf32>
    %580 = arith.mulf %579, %572 : vector<2x256xf32>
    %cst_214 = arith.constant -0.284496725 : f32
    %581 = vector.broadcast %cst_214 : f32 to vector<2x256xf32>
    %582 = arith.addf %580, %581 : vector<2x256xf32>
    %583 = arith.mulf %582, %572 : vector<2x256xf32>
    %cst_215 = arith.constant 0.254829586 : f32
    %584 = vector.broadcast %cst_215 : f32 to vector<2x256xf32>
    %585 = arith.addf %583, %584 : vector<2x256xf32>
    %586 = arith.mulf %585, %572 : vector<2x256xf32>
    %cst_216 = arith.constant 0.000000e+00 : f32
    %587 = vector.broadcast %cst_216 : f32 to vector<2x256xf32>
    %588 = arith.subf %587, %563 : vector<2x256xf32>
    %589 = arith.mulf %588, %563 : vector<2x256xf32>
    %590 = math.exp %589 : vector<2x256xf32>
    %591 = arith.mulf %586, %590 : vector<2x256xf32>
    %cst_217 = arith.constant 1.000000e+00 : f32
    %592 = vector.broadcast %cst_217 : f32 to vector<2x256xf32>
    %593 = arith.subf %592, %591 : vector<2x256xf32>
    %594 = arith.mulf %562, %593 : vector<2x256xf32>
    %595 = arith.subf %555, %594 : vector<2x256xf32>
    %cst_218 = arith.constant 4.76837158E-7 : f32
    %596 = vector.broadcast %cst_218 : f32 to vector<2x256xf32>
    %597 = arith.addf %595, %596 : vector<2x256xf32>
    %cst_219 = arith.constant 1.000000e+00 : f32
    %598 = vector.broadcast %cst_219 : f32 to vector<2x256xf32>
    %599 = arith.subf %598, %494 : vector<2x256xf32>
    %600 = arith.mulf %599, %514 : vector<2x256xf32>
    %cst_220 = arith.constant 0.000000e+00 : f32
    %601 = vector.broadcast %cst_220 : f32 to vector<2x256xf32>
    %602 = arith.cmpf olt, %600, %601 : vector<2x256xf32>
    %cst_221 = arith.constant -1.000000e+00 : f32
    %cst_222 = arith.constant 1.000000e+00 : f32
    %603 = vector.broadcast %cst_221 : f32 to vector<2x256xf32>
    %604 = vector.broadcast %cst_222 : f32 to vector<2x256xf32>
    %605 = arith.select %602, %603, %604 : vector<2x256xi1>, vector<2x256xf32>
    %606 = math.absf %600 : vector<2x256xf32>
    %cst_223 = arith.constant 0.327591091 : f32
    %607 = vector.broadcast %cst_223 : f32 to vector<2x256xf32>
    %608 = arith.mulf %607, %606 : vector<2x256xf32>
    %cst_224 = arith.constant 1.000000e+00 : f32
    %609 = vector.broadcast %cst_224 : f32 to vector<2x256xf32>
    %610 = arith.addf %609, %608 : vector<2x256xf32>
    %611 = tpu.reciprocal %610 {approx = true} : vector<2x256xf32> -> vector<2x256xf32>
    %612 = arith.mulf %610, %611 : vector<2x256xf32>
    %cst_225 = arith.constant 2.000000e+00 : f32
    %613 = vector.broadcast %cst_225 : f32 to vector<2x256xf32>
    %614 = arith.subf %613, %612 : vector<2x256xf32>
    %615 = arith.mulf %611, %614 : vector<2x256xf32>
    %cst_226 = arith.constant 1.06140542 : f32
    %616 = vector.broadcast %cst_226 : f32 to vector<2x256xf32>
    %617 = arith.mulf %616, %615 : vector<2x256xf32>
    %cst_227 = arith.constant -1.45315206 : f32
    %618 = vector.broadcast %cst_227 : f32 to vector<2x256xf32>
    %619 = arith.addf %617, %618 : vector<2x256xf32>
    %620 = arith.mulf %619, %615 : vector<2x256xf32>
    %cst_228 = arith.constant 1.42141378 : f32
    %621 = vector.broadcast %cst_228 : f32 to vector<2x256xf32>
    %622 = arith.addf %620, %621 : vector<2x256xf32>
    %623 = arith.mulf %622, %615 : vector<2x256xf32>
    %cst_229 = arith.constant -0.284496725 : f32
    %624 = vector.broadcast %cst_229 : f32 to vector<2x256xf32>
    %625 = arith.addf %623, %624 : vector<2x256xf32>
    %626 = arith.mulf %625, %615 : vector<2x256xf32>
    %cst_230 = arith.constant 0.254829586 : f32
    %627 = vector.broadcast %cst_230 : f32 to vector<2x256xf32>
    %628 = arith.addf %626, %627 : vector<2x256xf32>
    %629 = arith.mulf %628, %615 : vector<2x256xf32>
    %cst_231 = arith.constant 0.000000e+00 : f32
    %630 = vector.broadcast %cst_231 : f32 to vector<2x256xf32>
    %631 = arith.subf %630, %606 : vector<2x256xf32>
    %632 = arith.mulf %631, %606 : vector<2x256xf32>
    %633 = math.exp %632 : vector<2x256xf32>
    %634 = arith.mulf %629, %633 : vector<2x256xf32>
    %cst_232 = arith.constant 1.000000e+00 : f32
    %635 = vector.broadcast %cst_232 : f32 to vector<2x256xf32>
    %636 = arith.subf %635, %634 : vector<2x256xf32>
    %637 = arith.mulf %605, %636 : vector<2x256xf32>
    %cst_233 = arith.constant -1.000000e+00 : f32
    %638 = vector.broadcast %cst_233 : f32 to vector<2x256xf32>
    %639 = arith.subf %638, %494 : vector<2x256xf32>
    %640 = arith.mulf %639, %514 : vector<2x256xf32>
    %cst_234 = arith.constant 0.000000e+00 : f32
    %641 = vector.broadcast %cst_234 : f32 to vector<2x256xf32>
    %642 = arith.cmpf olt, %640, %641 : vector<2x256xf32>
    %cst_235 = arith.constant -1.000000e+00 : f32
    %cst_236 = arith.constant 1.000000e+00 : f32
    %643 = vector.broadcast %cst_235 : f32 to vector<2x256xf32>
    %644 = vector.broadcast %cst_236 : f32 to vector<2x256xf32>
    %645 = arith.select %642, %643, %644 : vector<2x256xi1>, vector<2x256xf32>
    %646 = math.absf %640 : vector<2x256xf32>
    %cst_237 = arith.constant 0.327591091 : f32
    %647 = vector.broadcast %cst_237 : f32 to vector<2x256xf32>
    %648 = arith.mulf %647, %646 : vector<2x256xf32>
    %cst_238 = arith.constant 1.000000e+00 : f32
    %649 = vector.broadcast %cst_238 : f32 to vector<2x256xf32>
    %650 = arith.addf %649, %648 : vector<2x256xf32>
    %651 = tpu.reciprocal %650 {approx = true} : vector<2x256xf32> -> vector<2x256xf32>
    %652 = arith.mulf %650, %651 : vector<2x256xf32>
    %cst_239 = arith.constant 2.000000e+00 : f32
    %653 = vector.broadcast %cst_239 : f32 to vector<2x256xf32>
    %654 = arith.subf %653, %652 : vector<2x256xf32>
    %655 = arith.mulf %651, %654 : vector<2x256xf32>
    %cst_240 = arith.constant 1.06140542 : f32
    %656 = vector.broadcast %cst_240 : f32 to vector<2x256xf32>
    %657 = arith.mulf %656, %655 : vector<2x256xf32>
    %cst_241 = arith.constant -1.45315206 : f32
    %658 = vector.broadcast %cst_241 : f32 to vector<2x256xf32>
    %659 = arith.addf %657, %658 : vector<2x256xf32>
    %660 = arith.mulf %659, %655 : vector<2x256xf32>
    %cst_242 = arith.constant 1.42141378 : f32
    %661 = vector.broadcast %cst_242 : f32 to vector<2x256xf32>
    %662 = arith.addf %660, %661 : vector<2x256xf32>
    %663 = arith.mulf %662, %655 : vector<2x256xf32>
    %cst_243 = arith.constant -0.284496725 : f32
    %664 = vector.broadcast %cst_243 : f32 to vector<2x256xf32>
    %665 = arith.addf %663, %664 : vector<2x256xf32>
    %666 = arith.mulf %665, %655 : vector<2x256xf32>
    %cst_244 = arith.constant 0.254829586 : f32
    %667 = vector.broadcast %cst_244 : f32 to vector<2x256xf32>
    %668 = arith.addf %666, %667 : vector<2x256xf32>
    %669 = arith.mulf %668, %655 : vector<2x256xf32>
    %cst_245 = arith.constant 0.000000e+00 : f32
    %670 = vector.broadcast %cst_245 : f32 to vector<2x256xf32>
    %671 = arith.subf %670, %646 : vector<2x256xf32>
    %672 = arith.mulf %671, %646 : vector<2x256xf32>
    %673 = math.exp %672 : vector<2x256xf32>
    %674 = arith.mulf %669, %673 : vector<2x256xf32>
    %cst_246 = arith.constant 1.000000e+00 : f32
    %675 = vector.broadcast %cst_246 : f32 to vector<2x256xf32>
    %676 = arith.subf %675, %674 : vector<2x256xf32>
    %677 = arith.mulf %645, %676 : vector<2x256xf32>
    %678 = arith.subf %637, %677 : vector<2x256xf32>
    %cst_247 = arith.constant 4.8828125E-4 : f32
    %679 = vector.broadcast %cst_247 : f32 to vector<2x256xf32>
    %680 = arith.addf %678, %679 : vector<2x256xf32>
    %681 = tpu.reciprocal %680 {approx = true} : vector<2x256xf32> -> vector<2x256xf32>
    %682 = arith.mulf %597, %681 : vector<2x256xf32>
    %683 = math.log %682 : vector<2x256xf32>
    %cst_248 = arith.constant 0.000000e+00 : f32
    %684 = vector.broadcast %cst_248 : f32 to vector<2x256xf32>
    %685 = arith.subf %684, %683 : vector<2x256xf32>
    %cst_249 = arith.constant 1.44269502 : f32
    %686 = vector.broadcast %cst_249 : f32 to vector<2x256xf32>
    %687 = arith.mulf %685, %686 : vector<2x256xf32>
    %688 = arith.addf %476, %687 : vector<2x256xf32>
    %c0_250 = arith.constant 0 : index
    %c0_251 = arith.constant 0 : index
    %689 = vector.load %arg5[%c0_250, %c0_251] : memref<2x256xf32, #tpu.memory_space<vmem>>, vector<2x256xf32>
    tpu.vector_store %arg5[%c0_250, %c0_251], %688 {strides = array<i32>} : memref<2x256xf32, #tpu.memory_space<vmem>>, vector<2x256xf32>,
    return
  }
  func.func @transform_0(%arg0: i32) -> (i32, i32, i32) {
    %c0_i32 = arith.constant 0 : i32
    %c0_i32_0 = arith.constant 0 : i32
    %c0_i32_1 = arith.constant 0 : i32
    return %c0_i32, %arg0, %c0_i32_0 : i32, i32, i32
  }
  func.func @transform_1(%arg0: i32) -> (i32, i32) {
    %c0_i32 = arith.constant 0 : i32
    %c0_i32_0 = arith.constant 0 : i32
    %c0_i32_1 = arith.constant 0 : i32
    return %c0_i32, %c0_i32_0 : i32, i32
  }
  func.func @transform_2(%arg0: i32) -> (i32, i32) {
    %c0_i32 = arith.constant 0 : i32
    %c0_i32_0 = arith.constant 0 : i32
    %c0_i32_1 = arith.constant 0 : i32
    return %c0_i32, %c0_i32_0 : i32, i32
  }
  func.func @transform_3(%arg0: i32) -> i32 {
    %c0_i32 = arith.constant 0 : i32
    %c0_i32_0 = arith.constant 0 : i32
    return %c0_i32 : i32
  }
  func.func @transform_4(%arg0: i32) -> (i32, i32) {
    %c0_i32 = arith.constant 0 : i32
    %c0_i32_0 = arith.constant 0 : i32
    return %arg0, %c0_i32 : i32, i32
  }
}

</mosaic_0001>

<bundles_post_ra>
// kernel: tpu_custom_call.1
= control target key start
LH: loop header
LB: loop body
LE: loop exit
PB: predicated region body
PF: predicated region fallthrough
CT: control target
= control target key end

     0   :  { %9 = vsyncpa [#allocation3], 0  ;;  %s1470_s0 = inlined_call_operand.vmem [shape: f32[3,2,256], index: 0, kind: input, shape index: {}]   ;;  %s1471_s1 = inlined_call_operand.hbm [shape: f32[3,256], index: 1, kind: input, shape index: {}]   ;;  %s1472_s2 = inlined_call_operand.vmem [shape: f32[6,3], index: 2, kind: input, shape index: {}]   ;;  %s1473_s3 = inlined_call_operand.vmem [shape: f32[6], index: 3, kind: input, shape index: {}]   ;;  %s1474_s4 = inlined_call_operand.hbm [shape: f32[2,256], index: 4, kind: output, shape index: {}]  }
   0x1   :  { %10 = vsyncpa [#allocation5], 0 }
   0x2   :  { %11 = vsyncpa [#allocation8], 0 }
   0x3   :  { %12 = vsyncpa [#allocation4], 0  ;;  %s31_s17 = sshll.u32 %s1472_s2, 4  ;;  %s984_s18 = smov [#allocation2]   ;;  %s32_s17 = int_to_ptr.vmem [resolvable:$true] %s31_s17 }
   0x4   :  { %s21_s19 = sshll.u32 %s984_s18, 4  ;;  %s908_s22 = scalar_lea.hbm %s1471_s1, 128  ;;  %s22_s19 = int_to_ptr.vmem [resolvable:$true] %s21_s19 }
   0x5   :  { %p909_p0 = scmp.ne.s32.totalorder %s1471_s1, %s908_s22  ;;  %p912_p1 = scmp.lt.u32.totalorder %s908_s22, %s1471_s1 }
   0x7   :  { %p914_p2 = pnand %p912_p1, %p909_p0 }
   0x9   :  { %917 = shalt.err (!%p914_p2)
}
   0xa   :  { %s918_s27 = scalar_lea.vmem %s22_s19, 128  ;;  %p923_p4 = scmp.lt.s32.totalorder %s22_s19, %s22_s19 }
   0xb   :  { %p919_p3 = scmp.ne.s32.totalorder %s22_s19, %s918_s27  ;;  %p924_p5 = scmp.lt.s32.totalorder %s918_s27, %s918_s27 }
   0xd   :  { %p925_p6 = por %p924_p5, %p923_p4 }
   0xf   :  { %p926_p7 = pnand %p925_p6, %p919_p3 }
  0x11   :  { %929 = shalt.err (!%p926_p7)
}
  0x12   :  { %24 = dma.hbm_to_vmem [thread:$0]  %s1471_s1, 128, %s22_s19, [#allocation3]  }
  0x13   :  { %s930_s29 = scalar_lea.vmem %s32_s17, 128  ;;  %p935_p9 = scmp.lt.s32.totalorder %s32_s17, %s32_s17 }
  0x14   :  { %p931_p8 = scmp.ne.s32.totalorder %s32_s17, %s930_s29  ;;  %p936_p10 = scmp.lt.s32.totalorder %s930_s29, %s930_s29 }
  0x16   :  { %p937_p11 = por %p936_p10, %p935_p9 }
  0x18   :  { %p938_p12 = pnand %p937_p11, %p931_p8 }
  0x1a   :  { %941 = shalt.err (!%p938_p12)
}
  0x1b   :  { %s985_s30 = smov [#allocation6]   ;;  %s41_s7 = sshll.u32 %s1473_s3, 4  ;;  %s42_s7 = int_to_ptr.vmem [resolvable:$true] %s41_s7 }
  0x1c   :  { %34 = dma.vmem_to_smem %s32_s17, 128, %s985_s30, [#allocation5]  }
  0x1d   :  { %s942_s8 = scalar_lea.vmem %s42_s7, 16  ;;  %p947_p0 = scmp.lt.s32.totalorder %s42_s7, %s42_s7 }
  0x1e   :  { %p943_p13 = scmp.ne.s32.totalorder %s42_s7, %s942_s8  ;;  %p948_p1 = scmp.lt.s32.totalorder %s942_s8, %s942_s8 }
  0x20   :  { %p949_p2 = por %p948_p1, %p947_p0 }
  0x22   :  { %p950_p3 = pnand %p949_p2, %p943_p13 }
  0x24   :  { %953 = shalt.err (!%p950_p3)
}
  0x25   :  { %s986_s1 = smov [#allocation7]  }
  0x26   :  { %44 = dma.vmem_to_smem %s42_s7, 16, %s986_s1, [#allocation8]  }
  0x27   :  { %976 = dma.done.wait [#allocation3], 128  }
  0x28   :  { %977 = vsyncadd [#allocation3], 4294967168 }
  0x29   :  { %978 = dma.done.wait [#allocation5], 128  }
  0x2a   :  { %979 = vsyncadd [#allocation5], 4294967168 }
  0x2b   :  { %980 = dma.done.wait [#allocation8], 16  }
  0x2c   :  { %981 = vsyncadd [#allocation8], 4294967280 }
  0x2d   :  { %54 = sfence }
  0x2e   :  { %v805_v0 = vld [vmem:[%s1470_s0 + $0x4] sm:$0xf]  ;;  %v62_v1 = vlaneseq  ;;  %v987_v2 = vmov 1983009808   ;;  %v55_v5 = vld [vmem:[%s1470_s0] sm:$0xf] }
  0x2f   :  { %v101_v3 = vunpack.c.l.s4 %v987_v2  ;;  %v176_v4 = vmul.f32 2.0, %v805_v0  ;;  %v1044_v9 = vsub.f32 %v55_v5, %v805_v0  ;;  %s988_s12 = smov 127   ;;  %v806_v14 = vld [vmem:[%s1470_s0 + $0x8] sm:$0xf]  ;;  %s989_s15 = smov 112  }
  0x30   :  { %v63_v6 = vshrl.u32 %v62_v1, 7  ;;  %v1055_v16 = vsub.f32 %v806_v14, %v805_v0  ;;  %s990_s16 = smov 111   ;;  %v1059_v21 = vand.u32 127, %v62_v1  ;;  %v60_v22 = vld [vmem:[#allocation2] ss:$4 sm:$0x3] }
  0x31   :  { %v102_v7 = vunpack.c.0.s8 %v101_v3  ;;  %v1042_v8 = vadd.f32 -1.0, %v176_v4  ;;  %v73_v27 = vld [vmem:[#allocation2 + $0x1] ss:$4 sm:$0x3]  ;;  %s1102_s0 = sld [smem:[#allocation6 + $0x180]]  ;;  %s1114_s20 = sld [smem:[#allocation6 + $0x181]] }
  0x32   :  { %v64_v19 = vsub.s32 0, %v63_v6  ;;  %v68_v20 = vsub.s32 1, %v63_v6  ;;  %vm116_vm0 = vcmp.lt.s32.totalorder %v1059_v21, 127  ;;  %vm123_vm1 = vcmp.lt.s32.totalorder %v1059_v21, 112  ;;  %s1104_s17 = sld [smem:[#allocation6 + $0x200]]  ;;  %s1116_s21 = sld [smem:[#allocation6 + $0x201]] }
  0x33   :  { %v1046_v10 = vsub.s32 %v102_v7, %v63_v6  ;;  %v86_v53 = vld [vmem:[#allocation2 + $0x2] ss:$4 sm:$0x3]  ;;  %vm130_vm2 = vcmp.lt.s32.totalorder %v1059_v21, 111  ;;  %s1106_s18 = sld [smem:[#allocation6 + $0x280]]  ;;  %s1120_s22 = sld [smem:[#allocation6 + $0x281]] }
  0x34   :  { %v65_v25 = vrot.slane %v60_v22, %v64_v19  ;;  %v69_v26 = vrot.slane %v60_v22, %v68_v20  ;;  %v1067_v34 = vrot.slane %v73_v27, %v64_v19  ;;  %v1069_v35 = vrot.slane %v73_v27, %v68_v20  ;;  %s1108_s19 = sld [smem:[#allocation6]]  ;;  %s1122_s23 = sld [smem:[#allocation6 + $0x1]] }
  0x35   :  { %v185_v11 = vrot.slane %v1042_v8, %v1046_v10  ;;  %v106_v12 = vrot.slane %v1044_v9, %v1046_v10  ;;  %v258_v17 = vrot.slane %v1055_v16, %v1046_v10  ;;  %v1089_v61 = vrot.slane %v86_v53, %v64_v19  ;;  %s1124_s24 = sld [smem:[#allocation6 + $0x80]]  ;;  %s1126_s25 = sld [smem:[#allocation6 + $0x81]] }
  0x36   :  { %v1091_v62 = vrot.slane %v86_v53, %v68_v20  ;;  %s1128_s26 = sld [smem:[#allocation6 + $0x100]]  ;;  %s1130_s27 = sld [smem:[#allocation6 + $0x101]] }
  0x37   :  { %189 = vrot.lane.b32.xlu1 %v185_v11, %s988_s12  ;;  %110 = vrot.lane.b32.xlu0 %v106_v12, %s988_s12  ;;  %v186_v13 = vcombine.high %v185_v11, %v185_v11  ;;  %v107_v15 = vcombine.high %v106_v12, %v106_v12  ;;  %v259_v18 = vcombine.high %v258_v17, %v258_v17  ;;  %v340_v27 = vstv %s1102_s0  ;;  %s1156_s2 = sld [smem:[#allocation6 + $0x182]]  ;;  %s1160_s28 = sld [smem:[#allocation7 + $0x3]] }
  0x38   :  { %s1162_s29 = sld [smem:[#allocation6 + $0x202]]  ;;  %s1188_s8 = sld [smem:[#allocation7 + $0x4]] }
  0x39   :  { %s1168_s30 = sld [smem:[#allocation6 + $0x282]]  ;;  %s1191_s1 = sld [smem:[#allocation7]] }
  0x3a   :  { %s1174_s5 = sld [smem:[#allocation6 + $0x2]]  ;;  %s1199_s9 = sld [smem:[#allocation7 + $0x1]] }
  0x3b   :  { %191 = vrot.lane.b32.xlu1 %v186_v13, %s988_s12  ;;  %119 = vrot.lane.b32.xlu0 %v106_v12, %s989_s15  ;;  %s1181_s6 = sld [smem:[#allocation6 + $0x82]]  ;;  %s1209_s3 = sld [smem:[#allocation7 + $0x5]] }
  0x3c   :  { %v633_v53 = vstv %s1128_s26  ;;  %s1183_s7 = sld [smem:[#allocation6 + $0x102]]  ;;  %s992_s11 = smov [#allocation9]  }
  0x3d   :  { %s1201_s10 = sld [smem:[#allocation7 + $0x2]] }
  0x3f   :  { %121 = vrot.lane.b32.xlu1 %v107_v15, %s989_s15  ;;  %112 = vrot.lane.b32.xlu0 %v107_v15, %s988_s12 }
  0x43   :  { %197 = vrot.lane.b32.xlu1 %v186_v13, %s989_s15  ;;  %195 = vrot.lane.b32.xlu0 %v185_v11, %s989_s15 }
  0x47   :  { %264 = vrot.lane.b32.xlu1 %v259_v18, %s988_s12  ;;  %262 = vrot.lane.b32.xlu0 %v258_v17, %s988_s12  ;;  %s794_s12 = sshll.u32 %s992_s11, 4  ;;  %s795_s12 = int_to_ptr.vmem [resolvable:$true] %s794_s12 }
  0x48   :  { %s954_s13 = scalar_lea.vmem %s795_s12, 64  ;;  %p959_p5 = scmp.lt.s32.totalorder %s795_s12, %s795_s12 }
  0x49   :  { %p955_p4 = scmp.ne.s32.totalorder %s795_s12, %s954_s13  ;;  %p960_p6 = scmp.lt.s32.totalorder %s954_s13, %s954_s13 }
  0x4b   :  { %128 = vrot.lane.b32.xlu1 %v107_v15, %s990_s16  ;;  %126 = vrot.lane.b32.xlu0 %v106_v12, %s990_s16  ;;  %p961_p7 = por %p960_p6, %p959_p5 }
  0x4d   :  { %p962_p8 = pnand %p961_p7, %p955_p4 }
  0x4f   :  { %203 = vrot.lane.b32.xlu1 %v186_v13, %s990_s16  ;;  %201 = vrot.lane.b32.xlu0 %v185_v11, %s990_s16 }
  0x53   :  { %270 = vrot.lane.b32.xlu1 %v259_v18, %s989_s15  ;;  %268 = vrot.lane.b32.xlu0 %v258_v17, %s989_s15 }
  0x57   :  { %276 = vrot.lane.b32.xlu1 %v259_v18, %s990_s16  ;;  %274 = vrot.lane.b32.xlu0 %v258_v17, %s990_s16 }
  0xa9   :  { %v190_v23 = vpop.permute.xlu1 %189  ;;  %v111_v24 = vpop.permute.xlu0 %110 }
  0xad   :  { %v192_v28 = vpop.permute.xlu1 %191  ;;  %v120_v29 = vpop.permute.xlu0 %119 }
  0xae   :  { %v193_v30 = vsel %vm116_vm0, %v190_v23, %v192_v28  ;;  %v194_v31 = vsel %vm116_vm0, %v192_v28, %v190_v23  ;;  %v494_v28 = vstv %s1104_s17 }
  0xaf   :  { %v207_v32 = vmul.f32 %v193_v30, %v65_v25  ;;  %v208_v33 = vmul.f32 %v194_v31, %v69_v26 }
  0xb1   :  { %v211_v36 = vcombine.low %v207_v32, %v208_v33  ;;  %v122_v37 = vpop.permute.xlu1 %121  ;;  %v113_v38 = vpop.permute.xlu0 %112 }
  0xb2   :  { %v124_v39 = vsel %vm123_vm1, %v120_v29, %v122_v37  ;;  %v125_v40 = vsel %vm123_vm1, %v122_v37, %v120_v29  ;;  %v117_v41 = vsel %vm116_vm0, %v111_v24, %v113_v38  ;;  %v118_v42 = vsel %vm116_vm0, %v113_v38, %v111_v24 }
  0xb3   :  { %v147_v43 = vmul.f32 %v124_v39, %v1067_v34  ;;  %v148_v44 = vmul.f32 %v125_v40, %v1069_v35  ;;  %v133_v45 = vmul.f32 %v117_v41, %v65_v25  ;;  %v134_v46 = vmul.f32 %v118_v42, %v69_v26 }
  0xb4   :  { %v218_v54 = vrot.slane %v211_v36, %v1046_v10  ;;  %v649_v29 = vstv %s1106_s18  ;;  %v324_v36 = vstv %s1108_s19  ;;  %v343_v38 = vstv %s1114_s20 }
  0xb5   :  { %v151_v47 = vcombine.low %v147_v43, %v148_v44  ;;  %v198_v48 = vpop.permute.xlu1 %197  ;;  %v196_v49 = vpop.permute.xlu0 %195  ;;  %v137_v50 = vcombine.low %v133_v45, %v134_v46  ;;  %v497_v45 = vstv %s1116_s21  ;;  %v652_v46 = vstv %s1120_s22 }
  0xb6   :  { %v199_v51 = vsel %vm123_vm1, %v196_v49, %v198_v48  ;;  %v200_v52 = vsel %vm123_vm1, %v198_v48, %v196_v49  ;;  %v220_v3 = vsub.f32 %v1042_v8, %v218_v54  ;;  %v478_v48 = vstv %s1124_s24 }
  0xb7   :  { %v221_v55 = vmul.f32 %v199_v51, %v1067_v34  ;;  %v222_v56 = vmul.f32 %v200_v52, %v1069_v35  ;;  %v144_v57 = vrot.slane %v137_v50, %v1046_v10  ;;  %v158_v63 = vrot.slane %v151_v47, %v1046_v10 }
  0xb8   :  { %v327_v47 = vstv %s1122_s23  ;;  %v481_v52 = vstv %s1126_s25  ;;  %v636_v54 = vstv %s1130_s27 }
  0xb9   :  { %v225_v58 = vcombine.low %v221_v55, %v222_v56  ;;  %v265_v59 = vpop.permute.xlu1 %264  ;;  %v263_v60 = vpop.permute.xlu0 %262  ;;  %v146_v0 = vsub.f32 %v1044_v9, %v144_v57 }
  0xba   :  { %v266_v1 = vsel %vm116_vm0, %v263_v60, %v265_v59  ;;  %v267_v2 = vsel %vm116_vm0, %v265_v59, %v263_v60 }
  0xbb   :  { %v232_v4 = vrot.slane %v225_v58, %v1046_v10  ;;  %v280_v5 = vmul.f32 %v266_v1, %v65_v25  ;;  %v281_v6 = vmul.f32 %v267_v2, %v69_v26  ;;  %v160_v7 = vsub.f32 %v146_v0, %v158_v63 }
  0xbd   :  { %v234_v11 = vsub.f32 %v220_v3, %v232_v4  ;;  %v284_v12 = vcombine.low %v280_v5, %v281_v6  ;;  %v129_v9 = vpop.permute.xlu1 %128  ;;  %v127_v13 = vpop.permute.xlu0 %126 }
  0xbe   :  { %v131_v8 = vsel %vm130_vm2, %v127_v13, %v129_v9  ;;  %v132_v14 = vsel %vm130_vm2, %v129_v9, %v127_v13 }
  0xbf   :  { %v161_v15 = vmul.f32 %v131_v8, %v1089_v61  ;;  %v162_v17 = vmul.f32 %v132_v14, %v1091_v62  ;;  %v291_v37 = vrot.slane %v284_v12, %v1046_v10 }
  0xc1   :  { %v165_v18 = vcombine.low %v161_v15, %v162_v17  ;;  %v204_v19 = vpop.permute.xlu1 %203  ;;  %v202_v20 = vpop.permute.xlu0 %201  ;;  %v347_v17 = vstv %s1156_s2 }
  0xc2   :  { %v205_v22 = vsel %vm130_vm2, %v202_v20, %v204_v19  ;;  %v206_v23 = vsel %vm130_vm2, %v204_v19, %v202_v20  ;;  %v501_v19 = vstv %s1162_s29  ;;  %v656_v20 = vstv %s1168_s30 }
  0xc3   :  { %v172_v24 = vrot.slane %v165_v18, %v1046_v10  ;;  %v235_v25 = vmul.f32 %v205_v22, %v1089_v61  ;;  %v236_v26 = vmul.f32 %v206_v23, %v1091_v62  ;;  %v331_v22 = vstv %s1174_s5 }
  0xc5   :  { %v174_v30 = vadd.f32 %v172_v24, %v160_v7  ;;  %v239_v31 = vcombine.low %v235_v25, %v236_v26  ;;  %v271_v32 = vpop.permute.xlu1 %270  ;;  %v269_v33 = vpop.permute.xlu0 %268  ;;  %v640_v25 = vstv %s1183_s7  ;;  %v351_v26 = vstv %s1160_s28 }
  0xc6   :  { %v272_v39 = vsel %vm123_vm1, %v269_v33, %v271_v32  ;;  %v273_v40 = vsel %vm123_vm1, %v271_v32, %v269_v33 }
  0xc7   :  { %v1149_v41 = vmul.f32 0.25, %v174_v30  ;;  %v246_v42 = vrot.slane %v239_v31, %v1046_v10  ;;  %v294_v43 = vmul.f32 %v272_v39, %v1067_v34  ;;  %v295_v44 = vmul.f32 %v273_v40, %v1069_v35 }
  0xc8   :  { %v293_v34 = vsub.f32 %v1055_v16, %v291_v37 }
  0xc9   :  { %v248_v49 = vadd.f32 %v246_v42, %v234_v11  ;;  %v277_v50 = vpop.permute.xlu1 %276  ;;  %v275_v51 = vpop.permute.xlu0 %274  ;;  %v298_v55 = vcombine.low %v294_v43, %v295_v44  ;;  %v341_v57 = vmul.f32 %v340_v27, %v1149_v41  ;;  %v495_v16 = vmul.f32 %v494_v28, %v1149_v41 }
  0xca   :  { %v278_v35 = vsel %vm130_vm2, %v275_v51, %v277_v50  ;;  %v279_v56 = vsel %vm130_vm2, %v277_v50, %v275_v51  ;;  %v650_v63 = vmul.f32 %v649_v29, %v1149_v41  ;;  %v325_v0 = vmul.f32 %v324_v36, %v1149_v41 }
  0xcb   :  { %v1177_v58 = vmul.f32 0.25, %v248_v49  ;;  %v308_v59 = vmul.f32 %v278_v35, %v1089_v61  ;;  %v309_v60 = vmul.f32 %v279_v56, %v1091_v62  ;;  %v305_v21 = vrot.slane %v298_v55, %v1046_v10 }
  0xcc   :  { %v479_v5 = vmul.f32 %v478_v48, %v1149_v41  ;;  %v634_v14 = vmul.f32 %v633_v53, %v1149_v41  ;;  %v505_v27 = vstv %s1188_s8  ;;  %v335_v28 = vstv %s1191_s1 }
  0xcd   :  { %v344_v61 = vmul.f32 %v343_v38, %v1177_v58  ;;  %v498_v62 = vmul.f32 %v497_v45, %v1177_v58  ;;  %v653_v1 = vmul.f32 %v652_v46, %v1177_v58  ;;  %v312_v2 = vcombine.low %v308_v59, %v309_v60 }
  0xce   :  { %v307_v3 = vsub.f32 %v293_v34, %v305_v21  ;;  %v328_v4 = vmul.f32 %v327_v47, %v1177_v58  ;;  %v482_v6 = vmul.f32 %v481_v52, %v1177_v58  ;;  %v637_v15 = vmul.f32 %v636_v54, %v1177_v58 }
  0xcf   :  { %v345_v7 = vadd.f32 %v344_v61, %v341_v57  ;;  %v499_v11 = vadd.f32 %v498_v62, %v495_v16  ;;  %v654_v12 = vadd.f32 %v653_v1, %v650_v63  ;;  %v319_v9 = vrot.slane %v312_v2, %v1046_v10 }
  0xd0   :  { %v329_v13 = vadd.f32 %v328_v4, %v325_v0  ;;  %v483_v8 = vadd.f32 %v482_v6, %v479_v5  ;;  %v638_v23 = vadd.f32 %v637_v15, %v634_v14  ;;  %v485_v10 = vstv %s1181_s6 }
  0xd1   :  { %v321_v18 = vadd.f32 %v319_v9, %v307_v3  ;;  %v489_v36 = vstv %s1199_s9  ;;  %v644_v38 = vstv %s1201_s10  ;;  %v660_v49 = vstv %s1209_s3 }
  0xd2   :  { %v358_v34 = vadd.f32 0.001953125, %v1149_v41  ;;  %v512_v60 = vadd.f32 0.00390625, %v1177_v58 }
  0xd3   :  { %v1212_v24 = vmul.f32 0.25, %v321_v18 }
  0xd5   :  { %v348_v29 = vmul.f32 %v347_v17, %v1212_v24  ;;  %v502_v30 = vmul.f32 %v501_v19, %v1212_v24  ;;  %v657_v31 = vmul.f32 %v656_v20, %v1212_v24  ;;  %v332_v32 = vmul.f32 %v331_v22, %v1212_v24 }
  0xd6   :  { %v486_v33 = vmul.f32 %v485_v10, %v1212_v24  ;;  %v641_v37 = vmul.f32 %v640_v25, %v1212_v24  ;;  %v1234_v21 = vadd.f32 0.001953125, %v1212_v24 }
  0xd7   :  { %v349_v39 = vadd.f32 %v348_v29, %v345_v7  ;;  %v503_v40 = vadd.f32 %v502_v30, %v499_v11  ;;  %v658_v42 = vadd.f32 %v657_v31, %v654_v12  ;;  %v333_v43 = vadd.f32 %v332_v32, %v329_v13 }
  0xd8   :  { %v487_v44 = vadd.f32 %v486_v33, %v483_v8  ;;  %v642_v45 = vadd.f32 %v641_v37, %v638_v23 }
  0xd9   :  { %v352_v46 = vadd.f32 %v351_v26, %v349_v39  ;;  %v506_v47 = vadd.f32 %v505_v27, %v503_v40  ;;  %v336_v48 = vadd.f32 %v335_v28, %v333_v43  ;;  %v661_v59 = vadd.f32 %v660_v49, %v658_v42 }
  0xda   :  { %v490_v50 = vadd.f32 %v489_v36, %v487_v44  ;;  %v645_v51 = vadd.f32 %v644_v38, %v642_v45 }
  0xdb   :  { %v353_v52 = vand.u32 2147483647, %v352_v46  ;;  %v507_v53 = vand.u32 2147483647, %v506_v47  ;;  %v810_v54 = vclamps-f32 %v336_v48, 1.0 }
  0xdc   :  { %v819_v55 = vclamps-f32 %v490_v50, 1.0  ;;  %v1229_v35 = vclamps-f32 %v645_v51, 1.0  ;;  %v662_v5 = vand.u32 2147483647, %v661_v59 }
  0xdd   :  { %v354_v56 = vmin.f32 %v353_v52, 11.0  ;;  %v508_v57 = vmin.f32 %v507_v53, 11.0  ;;  %v359_v16 = vsub.f32 %v358_v34, %v810_v54  ;;  %v386_v63 = vsub.f32 %v1149_v41, %v810_v54 }
  0xde   :  { %v513_v62 = vsub.f32 %v512_v60, %v819_v55  ;;  %v540_v1 = vsub.f32 %v1177_v58, %v819_v55  ;;  %v668_v2 = vsub.f32 %v1234_v21, %v1229_v35  ;;  %v695_v6 = vsub.f32 %v1212_v24, %v1229_v35 }
  0xdf   :  { %v355_v0 = vmul.f32 0.6931472, %v354_v56  ;;  %v509_v61 = vmul.f32 0.6931472, %v508_v57  ;;  %v663_v41 = vmin.f32 %v662_v5, 11.0  ;;  %v415_v11 = vsub.f32 1.0, %v810_v54 }
  0xe0   :  { %v442_v12 = vsub.f32 -1.0, %v810_v54  ;;  %v569_v8 = vsub.f32 1.0, %v819_v55  ;;  %v596_v14 = vsub.f32 -1.0, %v819_v55  ;;  %v724_v47 = vsub.f32 1.0, %v1229_v35 }
  0xe1   :  { %v356_v3 = vmul.f32 1.442695, %v355_v0  ;;  %v510_v4 = vmul.f32 1.442695, %v509_v61  ;;  %v664_v7 = vmul.f32 0.6931472, %v663_v41 }
  0xe2   :  { %v751_v50 = vsub.f32 -1.0, %v1229_v35  ;;  %v991_v61 = vmov 1.0  }
  0xe3   :  { %842 = vpow2.f32 %v356_v3  ;;  %v665_v13 = vmul.f32 1.442695, %v664_v7 }
  0xe4   :  { %844 = vpow2.f32 %v510_v4 }
  0xe5   :  { %846 = vpow2.f32 %v665_v13 }
  0xed   :  { %v843_v9 = vpop.eup %842 }
  0xee   :  { %v845_v58 = vpop.eup %844  ;;  %v360_v15 = vmul.f32 %v843_v9, %v359_v16  ;;  %v1241_v17 = vmul.f32 %v843_v9, %v386_v63  ;;  %v1243_v18 = vmul.f32 %v843_v9, %v415_v11  ;;  %v1245_v19 = vmul.f32 %v843_v9, %v442_v12 }
  0xef   :  { %v1247_v20 = vmul.f32 %v845_v58, %v513_v62  ;;  %v1249_v22 = vmul.f32 %v845_v58, %v540_v1  ;;  %v1251_v23 = vmul.f32 %v845_v58, %v569_v8  ;;  %v1253_v10 = vmul.f32 %v845_v58, %v596_v14  ;;  %v1268_v16 = vpop.eup %846 }
  0xf0   :  { %v363_v25 = vand.u32 2147483647, %v360_v15  ;;  %v390_v26 = vand.u32 2147483647, %v1241_v17  ;;  %v419_v27 = vand.u32 2147483647, %v1243_v18  ;;  %v1285_v9 = vmul.f32 %v1268_v16, %v668_v2 }
  0xf1   :  { %v446_v39 = vand.u32 2147483647, %v1245_v19  ;;  %v517_v46 = vand.u32 2147483647, %v1247_v20  ;;  %vm361_vm3 = vcmp.lt.f32.partialorder %v360_v15, 0.0  ;;  %vm388_vm4 = vcmp.lt.f32.partialorder %v1241_v17, 0.0 }
  0xf2   :  { %v364_v28 = vmul.f32 0.3275911, %v363_v25  ;;  %v379_v29 = vsub.f32 0.0, %v363_v25  ;;  %v391_v30 = vmul.f32 0.3275911, %v390_v26  ;;  %v406_v31 = vsub.f32 0.0, %v390_v26 }
  0xf3   :  { %v420_v32 = vmul.f32 0.3275911, %v419_v27  ;;  %v435_v33 = vsub.f32 0.0, %v419_v27  ;;  %v447_v44 = vmul.f32 0.3275911, %v446_v39  ;;  %v462_v45 = vsub.f32 0.0, %v446_v39 }
  0xf4   :  { %v365_v36 = vadd.f32 1.0, %v364_v28  ;;  %v392_v37 = vadd.f32 1.0, %v391_v30  ;;  %v380_v38 = vmul.f32 %v379_v29, %v363_v25  ;;  %v407_v40 = vmul.f32 %v406_v31, %v390_v26 }
  0xf5   :  { %v421_v42 = vadd.f32 1.0, %v420_v32  ;;  %v436_v43 = vmul.f32 %v435_v33, %v419_v27  ;;  %v1260_v49 = vadd.f32 1.0, %v447_v44  ;;  %v518_v51 = vmul.f32 0.3275911, %v517_v46 }
  0xf6   :  { %848 = vrcp.f32 %v365_v36  ;;  %v381_v48 = vmul.f32 1.442695, %v380_v38  ;;  %v533_v52 = vsub.f32 0.0, %v517_v46  ;;  %v544_v53 = vand.u32 2147483647, %v1249_v22 }
  0xf7   :  { %850 = vrcp.f32 %v392_v37  ;;  %v408_v54 = vmul.f32 1.442695, %v407_v40  ;;  %v437_v34 = vmul.f32 1.442695, %v436_v43  ;;  %v463_v55 = vmul.f32 %v462_v45, %v446_v39 }
  0xf8   :  { %852 = vrcp.f32 %v421_v42  ;;  %v573_v56 = vand.u32 2147483647, %v1251_v23  ;;  %v1266_v57 = vadd.f32 1.0, %v518_v51  ;;  %v534_v59 = vmul.f32 %v533_v52, %v517_v46 }
  0xf9   :  { %854 = vrcp.f32 %v1260_v49  ;;  %v545_v60 = vmul.f32 0.3275911, %v544_v53  ;;  %v560_v63 = vsub.f32 0.0, %v544_v53  ;;  %v1273_v62 = vsel %vm361_vm3, -1.0, %v991_v61 }
  0xfa   :  { %856 = vpow2.f32 %v381_v48  ;;  %v574_v0 = vmul.f32 0.3275911, %v573_v56  ;;  %v589_v3 = vsub.f32 0.0, %v573_v56  ;;  %v464_v4 = vmul.f32 1.442695, %v463_v55 }
  0xfb   :  { %858 = vrcp.f32 %v1266_v57  ;;  %v1276_v1 = vadd.f32 1.0, %v545_v60  ;;  %v600_v41 = vand.u32 2147483647, %v1253_v10  ;;  %v535_v11 = vmul.f32 1.442695, %v534_v59 }
  0xfc   :  { %860 = vpow2.f32 %v408_v54  ;;  %v1278_v5 = vadd.f32 1.0, %v574_v0  ;;  %v561_v12 = vmul.f32 %v560_v63, %v544_v53  ;;  %v1290_v14 = vsel %vm388_vm4, -1.0, %v991_v61 }
  0xfd   :  { %862 = vpow2.f32 %v437_v34  ;;  %v601_v58 = vmul.f32 0.3275911, %v600_v41  ;;  %v590_v25 = vmul.f32 %v589_v3, %v573_v56  ;;  %v616_v26 = vsub.f32 0.0, %v600_v41 }
  0xfe   :  { %864 = vrcp.f32 %v1276_v1  ;;  %vm417_vm5 = vcmp.lt.f32.partialorder %v1243_v18, 0.0  ;;  %v562_v17 = vmul.f32 1.442695, %v561_v12  ;;  %v1301_v32 = vand.u32 2147483647, %v1285_v9 }
  0xff   :  { %866 = vrcp.f32 %v1278_v5  ;;  %v1295_v21 = vadd.f32 1.0, %v601_v58  ;;  %v617_v29 = vmul.f32 %v616_v26, %v600_v41  ;;  %v1309_v38 = vmul.f32 %v1268_v16, %v695_v6 }
 0x100   :  { %v849_v7 = vpop.eup %848  ;;  %868 = vpow2.f32 %v464_v4  ;;  %v1312_v39 = vmul.f32 %v1268_v16, %v724_v47  ;;  %v673_v45 = vmul.f32 0.3275911, %v1301_v32  ;;  %vm444_vm6 = vcmp.lt.f32.partialorder %v1245_v19, 0.0 }
 0x101   :  { %v851_v13 = vpop.eup %850  ;;  %v367_v8 = vmul.f32 %v849_v7, %v365_v36  ;;  %870 = vpow2.f32 %v535_v11  ;;  %v618_v24 = vmul.f32 1.442695, %v617_v29  ;;  %v1331_v34 = vsel %vm417_vm5, -1.0, %v991_v61 }
 0x102   :  { %v394_v15 = vmul.f32 %v851_v13, %v392_v37  ;;  %v853_v2 = vpop.eup %852  ;;  %872 = vrcp.f32 %v1295_v21  ;;  %v591_v37 = vmul.f32 1.442695, %v590_v25  ;;  %v1333_v55 = vadd.f32 1.0, %v673_v45 }
 0x103   :  { %v368_v27 = vsub.f32 2.0, %v367_v8  ;;  %v423_v31 = vmul.f32 %v853_v2, %v421_v42  ;;  %v855_v33 = vpop.eup %854  ;;  %874 = vpow2.f32 %v562_v17  ;;  %v1343_v18 = vsel %vm444_vm6, -1.0, %v991_v61 }
 0x104   :  { %v395_v28 = vsub.f32 2.0, %v394_v15  ;;  %v1314_v40 = vpop.eup %856  ;;  %v450_v44 = vmul.f32 %v855_v33, %v1260_v49  ;;  %876 = vpow2.f32 %v591_v37  ;;  %vm515_vm7 = vcmp.lt.f32.partialorder %v1247_v20, 0.0 }
 0x105   :  { %v1297_v30 = vmul.f32 %v849_v7, %v368_v27  ;;  %v424_v43 = vsub.f32 2.0, %v423_v31  ;;  %v859_v46 = vpop.eup %858  ;;  %878 = vpow2.f32 %v618_v24  ;;  %vm542_vm8 = vcmp.lt.f32.partialorder %v1249_v22, 0.0 }
 0x106   :  { %v1303_v36 = vmul.f32 %v851_v13, %v395_v28  ;;  %v1321_v6 = vpop.eup %860  ;;  %v451_v52 = vsub.f32 2.0, %v450_v44  ;;  %v521_v53 = vmul.f32 %v859_v46, %v1266_v57  ;;  %880 = vrcp.f32 %v1333_v55 }
 0x107   :  { %v370_v42 = vmul.f32 1.0614054, %v1297_v30  ;;  %v1323_v51 = vmul.f32 %v853_v2, %v424_v43  ;;  %v1326_v54 = vpop.eup %862  ;;  %vm571_vm9 = vcmp.lt.f32.partialorder %v1251_v23, 0.0  ;;  %v543_v22 = vsel %vm542_vm8, -1.0, %v991_v61 }
 0x108   :  { %v397_v48 = vmul.f32 1.0614054, %v1303_v36  ;;  %v865_v56 = vpop.eup %864  ;;  %v1337_v63 = vmul.f32 %v855_v33, %v451_v52  ;;  %v522_v0 = vsub.f32 2.0, %v521_v53  ;;  %vm598_vm10 = vcmp.lt.f32.partialorder %v1253_v10, 0.0 }
 0x109   :  { %v371_v47 = vadd.f32 -1.4531521, %v370_v42  ;;  %v426_v60 = vmul.f32 1.0614054, %v1323_v51  ;;  %v867_v57 = vpop.eup %866  ;;  %v548_v4 = vmul.f32 %v865_v56, %v1276_v1  ;;  %v599_v10 = vsel %vm598_vm10, -1.0, %v991_v61 }
 0x10a   :  { %v398_v49 = vadd.f32 -1.4531521, %v397_v48  ;;  %v1346_v41 = vpop.eup %868  ;;  %v453_v12 = vmul.f32 1.0614054, %v1337_v63  ;;  %v1349_v13 = vmul.f32 %v859_v46, %v522_v0  ;;  %v577_v25 = vmul.f32 %v867_v57, %v1278_v5 }
 0x10b   :  { %v372_v59 = vmul.f32 %v371_v47, %v1297_v30  ;;  %v427_v11 = vadd.f32 -1.4531521, %v426_v60  ;;  %v1351_v8 = vpop.eup %870  ;;  %v549_v15 = vsub.f32 2.0, %v548_v4  ;;  %vm670_vm11 = vcmp.lt.f32.partialorder %v1285_v9, 0.0 }
 0x10c   :  { %v399_v3 = vmul.f32 %v398_v49, %v1303_v36  ;;  %v873_v19 = vpop.eup %872  ;;  %v454_v27 = vadd.f32 -1.4531521, %v453_v12  ;;  %v524_v2 = vmul.f32 1.0614054, %v1349_v13  ;;  %v578_v29 = vsub.f32 2.0, %v577_v25 }
 0x10d   :  { %v373_v7 = vadd.f32 1.4214138, %v372_v59  ;;  %v428_v26 = vmul.f32 %v427_v11, %v1323_v51  ;;  %v1359_v17 = vmul.f32 %v865_v56, %v549_v15  ;;  %v604_v31 = vmul.f32 %v873_v19, %v1295_v21  ;;  %v1363_v43 = vpop.eup %874 }
 0x10e   :  { %v400_v58 = vadd.f32 1.4214138, %v399_v3  ;;  %v455_v5 = vmul.f32 %v454_v27, %v1337_v63  ;;  %v525_v42 = vadd.f32 -1.4531521, %v524_v2  ;;  %v1366_v46 = vmul.f32 %v867_v57, %v578_v29  ;;  %v1371_v53 = vpop.eup %876 }
 0x10f   :  { %v374_v1 = vmul.f32 %v373_v7, %v1297_v30  ;;  %v429_v37 = vadd.f32 1.4214138, %v428_v26  ;;  %v551_v45 = vmul.f32 1.0614054, %v1359_v17  ;;  %v605_v48 = vsub.f32 2.0, %v604_v31  ;;  %v1378_v7 = vpop.eup %878 }
 0x110   :  { %v401_v28 = vmul.f32 %v400_v58, %v1303_v36  ;;  %v456_v52 = vadd.f32 1.4214138, %v455_v5  ;;  %v526_v21 = vmul.f32 %v525_v42, %v1349_v13  ;;  %v580_v59 = vmul.f32 1.0614054, %v1366_v46  ;;  %v881_v27 = vpop.eup %880 }
 0x111   :  { %v375_v33 = vadd.f32 -0.28449672, %v374_v1  ;;  %v430_v47 = vmul.f32 %v429_v37, %v1323_v51  ;;  %v552_v56 = vadd.f32 -1.4531521, %v551_v45  ;;  %v1375_v60 = vmul.f32 %v873_v19, %v605_v48 }
 0x112   :  { %v402_v44 = vadd.f32 -0.28449672, %v401_v28  ;;  %v457_v3 = vmul.f32 %v456_v52, %v1337_v63  ;;  %v527_v4 = vadd.f32 1.4214138, %v526_v21  ;;  %v581_v58 = vadd.f32 -1.4531521, %v580_v59 }
 0x113   :  { %v376_v24 = vmul.f32 %v375_v33, %v1297_v30  ;;  %v431_v57 = vadd.f32 -0.28449672, %v430_v47  ;;  %v553_v12 = vmul.f32 %v552_v56, %v1359_v17  ;;  %v607_v15 = vmul.f32 1.0614054, %v1375_v60 }
 0x114   :  { %v403_v49 = vmul.f32 %v402_v44, %v1303_v36  ;;  %v458_v26 = vadd.f32 -0.28449672, %v457_v3  ;;  %v528_v19 = vmul.f32 %v527_v4, %v1349_v13  ;;  %v582_v29 = vmul.f32 %v581_v58, %v1366_v46 }
 0x115   :  { %v377_v0 = vadd.f32 0.2548296, %v376_v24  ;;  %v432_v1 = vmul.f32 %v431_v57, %v1323_v51  ;;  %v554_v28 = vadd.f32 1.4214138, %v553_v12  ;;  %v608_v31 = vadd.f32 -1.4531521, %v607_v15 }
 0x116   :  { %v404_v11 = vadd.f32 0.2548296, %v403_v49  ;;  %v459_v5 = vmul.f32 %v458_v26, %v1337_v63  ;;  %v583_v45 = vadd.f32 1.4214138, %v582_v29  ;;  %vm697_vm12 = vcmp.lt.f32.partialorder %v1309_v38, 0.0 }
 0x117   :  { %v378_v25 = vmul.f32 %v377_v0, %v1297_v30  ;;  %v433_v37 = vadd.f32 0.2548296, %v432_v1  ;;  %v529_v30 = vadd.f32 -0.28449672, %v528_v19  ;;  %v555_v44 = vmul.f32 %v554_v28, %v1359_v17 }
 0x118   :  { %v405_v2 = vmul.f32 %v404_v11, %v1303_v36  ;;  %v609_v48 = vmul.f32 %v608_v31, %v1375_v60  ;;  %v460_v47 = vadd.f32 0.2548296, %v459_v5  ;;  %vm726_vm13 = vcmp.lt.f32.partialorder %v1312_v39, 0.0 }
 0x119   :  { %v383_v33 = vmul.f32 %v1314_v40, %v378_v25  ;;  %v434_v36 = vmul.f32 %v433_v37, %v1323_v51  ;;  %v530_v52 = vmul.f32 %v529_v30, %v1349_v13  ;;  %v556_v49 = vadd.f32 -0.28449672, %v555_v44 }
 0x11a   :  { %v410_v42 = vmul.f32 %v1321_v6, %v405_v2  ;;  %v584_v40 = vmul.f32 %v583_v45, %v1366_v46  ;;  %v610_v56 = vadd.f32 1.4214138, %v609_v48  ;;  %v461_v0 = vmul.f32 %v460_v47, %v1337_v63 }
 0x11b   :  { %v384_v24 = vsub.f32 1.0, %v383_v33  ;;  %v439_v6 = vmul.f32 %v1326_v54, %v434_v36  ;;  %v531_v57 = vadd.f32 0.2548296, %v530_v52  ;;  %v557_v51 = vmul.f32 %v556_v49, %v1359_v17 }
 0x11c   :  { %v411_v21 = vsub.f32 1.0, %v410_v42  ;;  %v585_v4 = vadd.f32 -0.28449672, %v584_v40  ;;  %v611_v11 = vmul.f32 %v610_v56, %v1375_v60  ;;  %v466_v58 = vmul.f32 %v1346_v41, %v461_v0 }
 0x11d   :  { %v1397_v59 = vmul.f32 %v384_v24, %v1273_v62  ;;  %v440_v12 = vsub.f32 1.0, %v439_v6  ;;  %v532_v15 = vmul.f32 %v531_v57, %v1349_v13  ;;  %v676_v62 = vmul.f32 %v881_v27, %v1333_v55 }
 0x11e   :  { %v1402_v3 = vmul.f32 %v411_v21, %v1290_v14  ;;  %v558_v63 = vadd.f32 0.2548296, %v557_v51  ;;  %v586_v25 = vmul.f32 %v585_v4, %v1366_v46  ;;  %v612_v14 = vadd.f32 -0.28449672, %v611_v11 }
 0x11f   :  { %v441_v1 = vmul.f32 %v440_v12, %v1331_v34  ;;  %v467_v26 = vsub.f32 1.0, %v466_v58  ;;  %v537_v19 = vmul.f32 %v1351_v8, %v532_v15  ;;  %v677_v2 = vsub.f32 2.0, %v676_v62 }
 0x120   :  { %v413_v54 = vsub.f32 %v1397_v59, %v1402_v3  ;;  %v516_v41 = vsel %vm515_vm7, -1.0, %v991_v61  ;;  %v559_v13 = vmul.f32 %v558_v63, %v1359_v17  ;;  %v587_v55 = vadd.f32 0.2548296, %v586_v25 }
 0x121   :  { %v613_v28 = vmul.f32 %v612_v14, %v1375_v60  ;;  %v468_v29 = vmul.f32 %v467_v26, %v1343_v18  ;;  %v538_v31 = vsub.f32 1.0, %v537_v19  ;;  %v1420_v33 = vmul.f32 %v881_v27, %v677_v2 }
 0x122   :  { %v699_v34 = vand.u32 2147483647, %v1309_v38  ;;  %v564_v8 = vmul.f32 %v1363_v43, %v559_v13  ;;  %v588_v37 = vmul.f32 %v587_v55, %v1366_v46  ;;  %v572_v47 = vsel %vm571_vm9, -1.0, %v991_v61 }
 0x123   :  { %v614_v20 = vadd.f32 0.2548296, %v613_v28  ;;  %v469_v5 = vsub.f32 %v441_v1, %v468_v29  ;;  %v679_v17 = vmul.f32 1.0614054, %v1420_v33  ;;  %v539_v42 = vmul.f32 %v538_v31, %v516_v41 }
 0x124   :  { %v700_v30 = vmul.f32 0.3275911, %v699_v34  ;;  %v565_v18 = vsub.f32 1.0, %v564_v8  ;;  %v593_v27 = vmul.f32 %v1371_v53, %v588_v37  ;;  %v728_v53 = vand.u32 2147483647, %v1312_v39 }
 0x125   :  { %v615_v44 = vmul.f32 %v614_v20, %v1375_v60  ;;  %v470_v45 = vadd.f32 0.00048828125, %v469_v5  ;;  %v680_v48 = vadd.f32 -1.4531521, %v679_v17  ;;  %v1440_v60 = vmul.f32 %v1268_v16, %v751_v50 }
 0x126   :  { %v701_v43 = vadd.f32 1.0, %v700_v30  ;;  %v566_v24 = vmul.f32 %v565_v18, %v543_v22  ;;  %v594_v46 = vsub.f32 1.0, %v593_v27  ;;  %v729_v40 = vmul.f32 0.3275911, %v728_v53 }
 0x127   :  { %v620_v36 = vmul.f32 %v1378_v7, %v615_v44  ;;  %882 = vrcp.f32 %v470_v45  ;;  %v681_v7 = vmul.f32 %v680_v48, %v1420_v33  ;;  %v755_v6 = vand.u32 2147483647, %v1440_v60 }
 0x128   :  { %v567_v52 = vsub.f32 %v539_v42, %v566_v24  ;;  %v595_v21 = vmul.f32 %v594_v46, %v572_v47  ;;  %884 = vrcp.f32 %v701_v43  ;;  %v730_v59 = vadd.f32 1.0, %v729_v40 }
 0x129   :  { %v621_v49 = vsub.f32 1.0, %v620_v36  ;;  %v682_v0 = vadd.f32 1.4214138, %v681_v7  ;;  %v688_v50 = vsub.f32 0.0, %v1301_v32  ;;  %v756_v16 = vmul.f32 0.3275911, %v755_v6 }
 0x12a   :  { %886 = vrcp.f32 %v730_v59  ;;  %v414_v57 = vadd.f32 4.7683716e-07, %v413_v54  ;;  %v715_v62 = vsub.f32 0.0, %v699_v34  ;;  %v744_v2 = vsub.f32 0.0, %v728_v53 }
 0x12b   :  { %v622_v56 = vmul.f32 %v621_v49, %v599_v10  ;;  %v757_v3 = vadd.f32 1.0, %v756_v16  ;;  %v683_v4 = vmul.f32 %v682_v0, %v1420_v33  ;;  %v689_v58 = vmul.f32 %v688_v50, %v1301_v32 }
 0x12c   :  { %v716_v19 = vmul.f32 %v715_v62, %v699_v34  ;;  %v568_v41 = vadd.f32 9.536743e-07, %v567_v52  ;;  %v745_v5 = vmul.f32 %v744_v2, %v728_v53  ;;  %v771_v18 = vsub.f32 0.0, %v755_v6 }
 0x12d   :  { %v623_v23 = vsub.f32 %v595_v21, %v622_v56  ;;  %v684_v63 = vadd.f32 -0.28449672, %v683_v4  ;;  %v690_v14 = vmul.f32 1.442695, %v689_v58  ;;  %vm753_vm14 = vcmp.lt.f32.partialorder %v1440_v60, 0.0 }
 0x12e   :  { %v717_v37 = vmul.f32 1.442695, %v716_v19  ;;  %v746_v24 = vmul.f32 1.442695, %v745_v5  ;;  %v772_v52 = vmul.f32 %v771_v18, %v755_v6  ;;  %v727_v5 = vsel %vm726_vm13, -1.0, %v991_v61 }
 0x12f   :  { %v624_v35 = vadd.f32 0.00048828125, %v623_v23  ;;  %v685_v13 = vmul.f32 %v684_v63, %v1420_v33 }
 0x130   :  { %v773_v0 = vmul.f32 1.442695, %v772_v52 }
 0x131   :  { %888 = vrcp.f32 %v624_v35  ;;  %v883_v51 = vpop.eup %882  ;;  %v686_v17 = vadd.f32 0.2548296, %v685_v13 }
 0x132   :  { %v885_v11 = vpop.eup %884  ;;  %v472_v12 = vmul.f32 %v883_v51, %v414_v57  ;;  %890 = vrcp.f32 %v757_v3 }
 0x133   :  { %v703_v15 = vmul.f32 %v885_v11, %v701_v43  ;;  %v687_v48 = vmul.f32 %v686_v17, %v1420_v33 }
 0x134   :  { %892 = vlog2.f32 %v472_v12  ;;  %v887_v1 = vpop.eup %886 }
 0x135   :  { %v704_v25 = vsub.f32 2.0, %v703_v15  ;;  %v732_v54 = vmul.f32 %v887_v1, %v730_v59  ;;  %894 = vpow2.f32 %v690_v14 }
 0x137   :  { %v705_v26 = vmul.f32 %v885_v11, %v704_v25  ;;  %v733_v29 = vsub.f32 2.0, %v732_v54  ;;  %v671_v25 = vsel %vm670_vm11, -1.0, %v991_v61 }
 0x139   :  { %v706_v55 = vmul.f32 1.0614054, %v705_v26  ;;  %v734_v20 = vmul.f32 %v887_v1, %v733_v29 }
 0x13b   :  { %v889_v28 = vpop.eup %888  ;;  %v707_v31 = vadd.f32 -1.4531521, %v706_v55  ;;  %v735_v34 = vmul.f32 1.0614054, %v734_v20 }
 0x13c   :  { %v626_v32 = vmul.f32 %v889_v28, %v568_v41  ;;  %v891_v8 = vpop.eup %890 }
 0x13d   :  { %v708_v30 = vmul.f32 %v707_v31, %v705_v26  ;;  %v759_v42 = vmul.f32 %v891_v8, %v757_v3  ;;  %v736_v22 = vadd.f32 -1.4531521, %v735_v34 }
 0x13e   :  { %896 = vlog2.f32 %v626_v32  ;;  %v893_v27 = vpop.eup %892 }
 0x13f   :  { %v709_v44 = vadd.f32 1.4214138, %v708_v30  ;;  %v760_v45 = vsub.f32 2.0, %v759_v42  ;;  %898 = vpow2.f32 %v717_v37  ;;  %v474_v36 = vmul.f32 0.6931472, %v893_v27  ;;  %v895_v49 = vpop.eup %894 }
 0x140   :  { %v737_v47 = vmul.f32 %v736_v22, %v734_v20  ;;  %v692_v7 = vmul.f32 %v895_v49, %v687_v48  ;;  %900 = vpow2.f32 %v746_v24 }
 0x141   :  { %v710_v43 = vmul.f32 %v709_v44, %v705_v26  ;;  %v761_v46 = vmul.f32 %v891_v8, %v760_v45  ;;  %v475_v59 = vsub.f32 0.0, %v474_v36  ;;  %902 = vpow2.f32 %v773_v0 }
 0x142   :  { %v738_v10 = vadd.f32 1.4214138, %v737_v47  ;;  %v693_v3 = vsub.f32 1.0, %v692_v7 }
 0x143   :  { %v711_v53 = vadd.f32 -0.28449672, %v710_v43  ;;  %v762_v21 = vmul.f32 1.0614054, %v761_v46  ;;  %v476_v11 = vmul.f32 1.442695, %v475_v59 }
 0x144   :  { %v739_v23 = vmul.f32 %v738_v10, %v734_v20  ;;  %v694_v1 = vmul.f32 %v693_v3, %v671_v25 }
 0x145   :  { %v712_v40 = vmul.f32 %v711_v53, %v705_v26  ;;  %v763_v56 = vadd.f32 -1.4531521, %v762_v21 }
 0x146   :  { %v740_v57 = vadd.f32 -0.28449672, %v739_v23 }
 0x147   :  { %v713_v50 = vadd.f32 0.2548296, %v712_v40  ;;  %v764_v33 = vmul.f32 %v763_v56, %v761_v46 }
 0x148   :  { %v897_v35 = vpop.eup %896  ;;  %v741_v58 = vmul.f32 %v740_v57, %v734_v20 }
 0x149   :  { %v628_v16 = vmul.f32 0.6931472, %v897_v35  ;;  %v714_v6 = vmul.f32 %v713_v50, %v705_v26  ;;  %v765_v51 = vadd.f32 1.4214138, %v764_v33  ;;  %v899_v4 = vpop.eup %898  ;;  %v698_v26 = vsel %vm697_vm12, -1.0, %v991_v61 }
 0x14a   :  { %v742_v14 = vadd.f32 0.2548296, %v741_v58  ;;  %v901_v41 = vpop.eup %900 }
 0x14b   :  { %v629_v12 = vsub.f32 0.0, %v628_v16  ;;  %v719_v15 = vmul.f32 %v899_v4, %v714_v6  ;;  %v766_v62 = vmul.f32 %v765_v51, %v761_v46  ;;  %v903_v8 = vpop.eup %902 }
 0x14c   :  { %v743_v2 = vmul.f32 %v742_v14, %v734_v20  ;;  %v754_v20 = vsel %vm753_vm14, -1.0, %v991_v61 }
 0x14d   :  { %v630_v63 = vmul.f32 1.442695, %v629_v12  ;;  %v720_v19 = vsub.f32 1.0, %v719_v15  ;;  %v767_v54 = vadd.f32 -0.28449672, %v766_v62 }
 0x14e   :  { %v748_v28 = vmul.f32 %v901_v41, %v743_v2 }
 0x14f   :  { %v631_v9 = vadd.f32 %v630_v63, %v476_v11  ;;  %v721_v13 = vmul.f32 %v720_v19, %v698_v26  ;;  %v768_v55 = vmul.f32 %v767_v54, %v761_v46 }
 0x150   :  { %v749_v38 = vsub.f32 1.0, %v748_v28 }
 0x151   :  { %v722_v29 = vsub.f32 %v694_v1, %v721_v13  ;;  %v769_v32 = vadd.f32 0.2548296, %v768_v55 }
 0x152   :  { %v750_v17 = vmul.f32 %v749_v38, %v727_v5 }
 0x153   :  { %v770_v31 = vmul.f32 %v769_v32, %v761_v46  ;;  %v723_v27 = vadd.f32 4.7683716e-07, %v722_v29 }
 0x155   :  { %v775_v37 = vmul.f32 %v903_v8, %v770_v31 }
 0x157   :  { %v776_v30 = vsub.f32 1.0, %v775_v37 }
 0x159   :  { %v777_v42 = vmul.f32 %v776_v30, %v754_v20 }
 0x15b   :  { %v778_v34 = vsub.f32 %v750_v17, %v777_v42 }
 0x15d   :  { %v779_v18 = vadd.f32 0.00048828125, %v778_v34 }
 0x15f   :  { %904 = vrcp.f32 %v779_v18 }
 0x169   :  { %v905_v44 = vpop.eup %904 }
 0x16a   :  { %v781_v45 = vmul.f32 %v905_v44, %v723_v27 }
 0x16c   :  { %906 = vlog2.f32 %v781_v45 }
 0x176   :  { %v907_v39 = vpop.eup %906 }
 0x177   :  { %v783_v22 = vmul.f32 0.6931472, %v907_v39 }
 0x179   :  { %v784_v48 = vsub.f32 0.0, %v783_v22 }
 0x17b   :  { %v785_v60 = vmul.f32 1.442695, %v784_v48 }
 0x17d   :  { %v786_v43 = vadd.f32 %v785_v60, %v631_v9 }
 0x17f   :  { %787 = vst [vmem:[#allocation9] sm:$0xf] %v786_v43 }
 0x180   :  { %965 = shalt.err (!%p962_p8)
}
 0x181   :  { %s966_s16 = scalar_lea.hbm %s1474_s4, 64 }
 0x182   :  { %p967_p9 = scmp.ne.s32.totalorder %s1474_s4, %s966_s16  ;;  %p970_p10 = scmp.lt.u32.totalorder %s966_s16, %s1474_s4 }
 0x184   :  { %p972_p11 = pnand %p970_p10, %p967_p9 }
 0x186   :  { %975 = shalt.err (!%p972_p11)
}
 0x187   :  { %797 = dma.vmem_to_hbm [thread:$0]  %s795_s12, 64, %s1474_s4, [#allocation4]  }
 0x188   :  { %982 = dma.done.wait [#allocation4], 64  }
 0x189   :  { %983 = vsyncadd [#allocation4], 4294967232 }
 0x18a   :  { %801 = vsyncpa [#allocation3], 1 }
 0x18b   :  { %802 = vsyncpa [#allocation4], 1 }
 0x18c   :  { %803 = vsyncpa [#allocation5], 1 }
 0x18d   :  { %804 = vsyncpa [#allocation8], 1 }

</bundles_post_ra>
